<compile_context>
chip_gen: v6e
topology: v6e:2x2x1
jax: 0.10.0
libtpu: 0.0.40
codegen_flags: <defaults>
</compile_context>

<pallas_src>
import functools
import math

import jax
import jax.numpy as jnp
from jax import lax
from jax.experimental import pallas as pl
from jax.experimental.pallas import tpu as pltpu

MXU_DTYPE = jnp.bfloat16      # matmul operand dtype (accumulation stays f32)
WGT_DTYPE = jnp.bfloat16      # resident weight storage dtype
ACT_DTYPE = jnp.bfloat16      # q/k/v / attention-context hand-off dtype
LN_EPS = 1e-5
NEG_INF = -1e30               # finite "-inf": avoids inf-inf NaNs in softmax


# ----------------------------------------------------------------------------
# Tiling helpers (keep last-two block dims (8,128)-aligned or full)
# ----------------------------------------------------------------------------
def _row_tile(n, target=256):
    """Largest multiple-of-8 divisor of n that is <= target (or n itself)."""
    if n <= target:
        return n
    t = (target // 8) * 8
    while t >= 8:
        if n % t == 0:
            return t
        t -= 8
    # TODO(synk): pad awkward row counts to a multiple of 8 instead of silently
    # falling back to one whole-array block.
    return n


def _col_tile(n, target=256):
    """Largest multiple-of-128 divisor of n that is <= target (or n itself)."""
    if n <= target:
        return n
    t = (target // 128) * 128
    while t >= 128:
        if n % t == 0:
            return t
        t -= 128
    return n


def _layernorm_f32(x, g, b):
    mean = jnp.mean(x, axis=-1, keepdims=True)
    var = jnp.mean((x - mean) ** 2, axis=-1, keepdims=True)
    return (x - mean) * lax.rsqrt(var + LN_EPS) * g + b


# ----------------------------------------------------------------------------
# Pallas kernels
# ----------------------------------------------------------------------------
def ln_proj_heads_kernel(x_ref, g_ref, b_ref, w_ref, bias_ref, *out_refs,
                         num_heads):
    """Fused LayerNorm + one matmul; each E-wide chunk of the result is split
    per head and written into a head-major [H, ts, Dh] output block."""
    x = x_ref[0].astype(jnp.float32)                       # [ts, E]
    xn = _layernorm_f32(x, g_ref[...].astype(jnp.float32),
                        b_ref[...].astype(jnp.float32))
    y = jnp.dot(xn.astype(MXU_DTYPE), w_ref[...],
                preferred_element_type=jnp.float32) + bias_ref[...].astype(jnp.float32)
    e = x.shape[-1]
    dh = e // num_heads
    for i, o_ref in enumerate(out_refs):
        chunk = y[:, i * e:(i + 1) * e]                    # [ts, E]
        for h in range(num_heads):
            o_ref[h] = chunk[:, h * dh:(h + 1) * dh].astype(o_ref.dtype)


def proj_heads_kernel(x_ref, w_ref, bias_ref, *out_refs, num_heads):
    """Single matmul (no LN), per-head head-major outputs (cross-attn K|V)."""
    x = x_ref[0]                                           # [ts, E]
    y = jnp.dot(x.astype(MXU_DTYPE), w_ref[...],
                preferred_element_type=jnp.float32) + bias_ref[...].astype(jnp.float32)
    e = x.shape[-1]
    dh = e // num_heads
    for i, o_ref in enumerate(out_refs):
        chunk = y[:, i * e:(i + 1) * e]
        for h in range(num_heads):
            o_ref[h] = chunk[:, h * dh:(h + 1) * dh].astype(o_ref.dtype)


def flash_attention_kernel(q_ref, k_ref, v_ref, o_ref, m_scr, l_scr, acc_scr,
                           *, causal):
    """Online-softmax attention for one (batch*head, q-tile); Sk is tiled on an
    'arbitrary' grid axis.  Causal mask generated in-kernel via iota; the query
    pre-scales (1/sqrt(E) module scale, 1/sqrt(Dh) MHA scale) are folded into
    the Q projection weights."""
    qi = pl.program_id(1)
    ki = pl.program_id(2)
    q_blk = q_ref.shape[1]
    k_blk = k_ref.shape[1]

    @pl.when(ki == 0)
    def _():
        m_scr[...] = jnp.full_like(m_scr, NEG_INF)
        l_scr[...] = jnp.zeros_like(l_scr)
        acc_scr[...] = jnp.zeros_like(acc_scr)

    def body():
        q = q_ref[0]                                       # [tq, Dh] bf16
        k = k_ref[0]                                       # [tk, Dh] bf16
        v = v_ref[0]
        # Contract last dims directly (no K transpose / relayout).
        s = lax.dot_general(q, k, (((1,), (1,)), ((), ())),
                            preferred_element_type=jnp.float32)   # [tq, tk]
        if causal:
            row = qi * q_blk + lax.broadcasted_iota(jnp.int32, s.shape, 0)
            col = ki * k_blk + lax.broadcasted_iota(jnp.int32, s.shape, 1)
            s = jnp.where(col > row, NEG_INF, s)
        m_prev = m_scr[...]
        m_new = jnp.maximum(m_prev, jnp.max(s, axis=-1, keepdims=True))
        alpha = jnp.exp(m_prev - m_new)
        p = jnp.exp(s - m_new)
        l_scr[...] = alpha * l_scr[...] + jnp.sum(p, axis=-1, keepdims=True)
        acc_scr[...] = alpha * acc_scr[...] + jnp.dot(
            p.astype(MXU_DTYPE), v, preferred_element_type=jnp.float32)
        m_scr[...] = m_new

    if causal:
        # Skip key tiles that lie entirely in the future of this query tile.
        pl.when(ki * k_blk <= qi * q_blk + (q_blk - 1))(body)
    else:
        body()

    @pl.when(ki == pl.num_programs(2) - 1)
    def _():
        o_ref[0] = (acc_scr[...] *
                    pl.reciprocal(l_scr[...], approx=True)).astype(o_ref.dtype)


def head_merge_proj_residual_kernel(ctx_ref, w_ref, bias_ref, res_ref, o_ref):
    """Merge heads, output projection, fused residual add:
    o = res + concat_h(ctx_h) @ Wo + bo."""
    num_heads = ctx_ref.shape[0]
    ctx = jnp.concatenate([ctx_ref[h] for h in range(num_heads)], axis=-1)
    y = jnp.dot(ctx.astype(MXU_DTYPE), w_ref[...],
                preferred_element_type=jnp.float32)
    o_ref[0] = (res_ref[0].astype(jnp.float32) + y
                + bias_ref[...].astype(jnp.float32)).astype(o_ref.dtype)


def ln_ffn_residual_kernel(x_ref, g_ref, b_ref, w1_ref, b1_ref, w2_ref, b2_ref,
                           o_ref, xn_scr, acc_scr):
    """Fused LN3 + Linear(E,4E) + ReLU + Linear(4E,E) + residual.

    Grid = (row tiles, hidden tiles). The hidden activation never leaves VMEM;
    the output accumulates across the hidden ("arbitrary") axis in f32 scratch.
    """
    j = pl.program_id(1)

    @pl.when(j == 0)
    def _():
        x = x_ref[...].astype(jnp.float32)
        xn_scr[...] = _layernorm_f32(
            x, g_ref[...].astype(jnp.float32),
            b_ref[...].astype(jnp.float32)).astype(xn_scr.dtype)
        acc_scr[...] = x + b2_ref[...].astype(jnp.float32)   # residual + final bias

    h = jnp.dot(xn_scr[...], w1_ref[...],
                preferred_element_type=jnp.float32) + b1_ref[...].astype(jnp.float32)
    h = jnp.maximum(h, 0.0)
    acc_scr[...] += jnp.dot(h.astype(MXU_DTYPE), w2_ref[...],
                            preferred_element_type=jnp.float32)

    @pl.when(j == pl.num_programs(1) - 1)
    def _():
        o_ref[...] = acc_scr[...].astype(o_ref.dtype)


# ----------------------------------------------------------------------------
# Pallas wrappers
# ----------------------------------------------------------------------------
def _as_tuple(outs):
    return tuple(outs) if isinstance(outs, (list, tuple)) else (outs,)


def pallas_ln_proj_heads(x3d, gamma, beta, w, b, n_out, num_heads):
    bsz, s, e = x3d.shape
    dh = e // num_heads
    m = w.shape[1]
    ts = _row_tile(s, target=256)
    kern = functools.partial(ln_proj_heads_kernel, num_heads=num_heads)
    outs = pl.pallas_call(
        kern,
        out_shape=tuple(jax.ShapeDtypeStruct((bsz * num_heads, s, dh), ACT_DTYPE)
                        for _ in range(n_out)),
        grid=(bsz, s // ts),
        in_specs=[
            pl.BlockSpec((1, ts, e), lambda bb, i: (bb, i, 0)),
            pl.BlockSpec((1, e), lambda bb, i: (0, 0)),
            pl.BlockSpec((1, e), lambda bb, i: (0, 0)),
            pl.BlockSpec((e, m), lambda bb, i: (0, 0)),
            pl.BlockSpec((1, m), lambda bb, i: (0, 0)),
        ],
        out_specs=tuple(pl.BlockSpec((num_heads, ts, dh), lambda bb, i: (bb, i, 0))
                        for _ in range(n_out)),
        compiler_params=pltpu.CompilerParams(
            dimension_semantics=("parallel", "parallel")),
    )(x3d, gamma.reshape(1, e), beta.reshape(1, e), w, b.reshape(1, m))
    return _as_tuple(outs)


def pallas_proj_heads(x3d, w, b, n_out, num_heads):
    bsz, s, e = x3d.shape
    dh = e // num_heads
    m = w.shape[1]
    ts = _row_tile(s, target=256)
    kern = functools.partial(proj_heads_kernel, num_heads=num_heads)
    outs = pl.pallas_call(
        kern,
        out_shape=tuple(jax.ShapeDtypeStruct((bsz * num_heads, s, dh), ACT_DTYPE)
                        for _ in range(n_out)),
        grid=(bsz, s // ts),
        in_specs=[
            pl.BlockSpec((1, ts, e), lambda bb, i: (bb, i, 0)),
            pl.BlockSpec((e, m), lambda bb, i: (0, 0)),
            pl.BlockSpec((1, m), lambda bb, i: (0, 0)),
        ],
        out_specs=tuple(pl.BlockSpec((num_heads, ts, dh), lambda bb, i: (bb, i, 0))
                        for _ in range(n_out)),
        compiler_params=pltpu.CompilerParams(
            dimension_semantics=("parallel", "parallel")),
    )(x3d, w, b.reshape(1, m))
    return _as_tuple(outs)


def pallas_flash_attention(q, k, v, *, causal):
    # q/k/v: [B*H, S, Dh] bf16, head-major.
    bh, sq, dh = q.shape
    sk = k.shape[1]
    tq = _row_tile(sq, target=256)
    tk = _row_tile(sk, target=512)
    kern = functools.partial(flash_attention_kernel, causal=causal)
    return pl.pallas_call(
        kern,
        out_shape=jax.ShapeDtypeStruct((bh, sq, dh), ACT_DTYPE),
        grid=(bh, sq // tq, sk // tk),
        in_specs=[
            pl.BlockSpec((1, tq, dh), lambda b, i, j: (b, i, 0)),
            pl.BlockSpec((1, tk, dh), lambda b, i, j: (b, j, 0)),
            pl.BlockSpec((1, tk, dh), lambda b, i, j: (b, j, 0)),
        ],
        out_specs=pl.BlockSpec((1, tq, dh), lambda b, i, j: (b, i, 0)),
        scratch_shapes=[
            pltpu.VMEM((tq, 1), jnp.float32),    # running max
            pltpu.VMEM((tq, 1), jnp.float32),    # running denom
            pltpu.VMEM((tq, dh), jnp.float32),   # running numerator
        ],
        compiler_params=pltpu.CompilerParams(
            dimension_semantics=("parallel", "parallel", "arbitrary")),
    )(q, k, v)


def pallas_head_merge_residual(ctx, w, b, res3d):
    # ctx: [B*H, S, Dh] bf16, res3d: [B, S, E] f32.
    bh, s, dh = ctx.shape
    bsz, _, e = res3d.shape
    num_heads = bh // bsz
    ts = _row_tile(s, target=256)
    return pl.pallas_call(
        head_merge_proj_residual_kernel,
        out_shape=jax.ShapeDtypeStruct((bsz, s, e), res3d.dtype),
        grid=(bsz, s // ts),
        in_specs=[
            pl.BlockSpec((num_heads, ts, dh), lambda bb, i: (bb, i, 0)),
            pl.BlockSpec((e, e), lambda bb, i: (0, 0)),
            pl.BlockSpec((1, e), lambda bb, i: (0, 0)),
            pl.BlockSpec((1, ts, e), lambda bb, i: (bb, i, 0)),
        ],
        out_specs=pl.BlockSpec((1, ts, e), lambda bb, i: (bb, i, 0)),
        compiler_params=pltpu.CompilerParams(
            dimension_semantics=("parallel", "parallel")),
    )(ctx, w, b.reshape(1, e), res3d)


def pallas_ln_ffn_residual(x2d, gamma, beta, w1, b1, w2, b2):
    n, e = x2d.shape
    hid = w1.shape[1]
    tm = _row_tile(n, target=256)
    th = _col_tile(hid, target=256)   # keep weight tiles small enough for v7x
    return pl.pallas_call(
        ln_ffn_residual_kernel,
        out_shape=jax.ShapeDtypeStruct((n, e), x2d.dtype),
        grid=(n // tm, hid // th),
        in_specs=[
            pl.BlockSpec((tm, e), lambda i, j: (i, 0)),
            pl.BlockSpec((1, e), lambda i, j: (0, 0)),
            pl.BlockSpec((1, e), lambda i, j: (0, 0)),
            pl.BlockSpec((e, th), lambda i, j: (0, j)),
            pl.BlockSpec((1, th), lambda i, j: (0, j)),
            pl.BlockSpec((th, e), lambda i, j: (j, 0)),
            pl.BlockSpec((1, e), lambda i, j: (0, 0)),
        ],
        out_specs=pl.BlockSpec((tm, e), lambda i, j: (i, 0)),
        scratch_shapes=[pltpu.VMEM((tm, e), jnp.bfloat16),   # normalized input
                        pltpu.VMEM((tm, e), jnp.float32)],   # f32 accumulator
        compiler_params=pltpu.CompilerParams(
            dimension_semantics=("parallel", "arbitrary"),
            vmem_limit_bytes=64 * 1024 * 1024),
    )(x2d, gamma.reshape(1, e), beta.reshape(1, e),
      w1, b1.reshape(1, hid), w2, b2.reshape(1, e))


# ----------------------------------------------------------------------------
# TransformerDecoderLayer forward (dropout = identity / eval mode)
# ----------------------------------------------------------------------------
def decoder_layer_forward(x, memory, params, num_heads, causal=True):
    # TODO(synk): nn.Dropout has no Pallas equivalent here; eval-mode identity.
    S, B, E = x.shape
    xb = jnp.transpose(x, (1, 0, 2))           # [B, S, E]   (batch-first)
    memb = jnp.transpose(memory, (1, 0, 2))    # [B, Ssrc, E]

    # --- self attention: LN1 fused with one QKV matmul (head-major outputs) --
    sa = params["sa"]
    q, k, v = pallas_ln_proj_heads(xb, params["ln1_g"], params["ln1_b"],
                                   sa["wqkv"], sa["bqkv"],
                                   n_out=3, num_heads=num_heads)
    ctx = pallas_flash_attention(q, k, v, causal=causal)
    xb = pallas_head_merge_residual(ctx, sa["wo"], sa["bo"], xb)

    # --- encoder-decoder attention (blanks: x_norm / scale, memory, memory) --
    ca = params["ca"]
    (q,) = pallas_ln_proj_heads(xb, params["ln2_g"], params["ln2_b"],
                                ca["wq"], ca["bq"],
                                n_out=1, num_heads=num_heads)
    k, v = pallas_proj_heads(memb, ca["wkv"], ca["bkv"],
                             n_out=2, num_heads=num_heads)
    ctx = pallas_flash_attention(q, k, v, causal=False)
    xb = pallas_head_merge_residual(ctx, ca["wo"], ca["bo"], xb)

    # --- feed forward: LN3 + Linear + ReLU + Linear + residual, one kernel ---
    x2 = pallas_ln_ffn_residual(xb.reshape(B * S, E),
                                params["ln3_g"], params["ln3_b"],
                                params["ff_w1"], params["ff_b1"],
                                params["ff_w2"], params["ff_b2"])
    return jnp.transpose(x2.reshape(B, S, E), (1, 0, 2))


# ----------------------------------------------------------------------------
# Pure-JAX f32 reference (uses the RAW / unfused parameters)
# ----------------------------------------------------------------------------
def ref_layernorm(x, g, b):
    mean = x.mean(-1, keepdims=True)
    var = ((x - mean) ** 2).mean(-1, keepdims=True)
    return (x - mean) / jnp.sqrt(var + LN_EPS) * g + b


def ref_mha(query, key, value, p, attn_mask, H):
    Sq, B, E = query.shape
    Sk = key.shape[0]
    Dh = E // H
    q = query.reshape(-1, E) @ p["wq"] + p["bq"]
    k = key.reshape(-1, E) @ p["wk"] + p["bk"]
    v = value.reshape(-1, E) @ p["wv"] + p["bv"]
    q = q.reshape(Sq, B * H, Dh).transpose(1, 0, 2) / math.sqrt(Dh)
    k = k.reshape(Sk, B * H, Dh).transpose(1, 0, 2)
    v = v.reshape(Sk, B * H, Dh).transpose(1, 0, 2)
    s = jnp.einsum("bqd,bkd->bqk", q, k)
    if attn_mask is not None:
        s = s + attn_mask
    p_att = jax.nn.softmax(s, axis=-1)
    o = jnp.einsum("bqk,bkd->bqd", p_att, v)
    o = o.transpose(1, 0, 2).reshape(Sq * B, E)
    return (o @ p["wo"] + p["bo"]).reshape(Sq, B, E)


def ref_forward(x, memory, params, tgt_mask, H):
    S, B, E = x.shape
    scale = params["scale"]
    xn = ref_layernorm(x.reshape(-1, E), params["ln1_g"], params["ln1_b"]).reshape(S, B, E)
    x = x + ref_mha(xn / scale, xn, xn, params["sa"], tgt_mask, H)
    xn = ref_layernorm(x.reshape(-1, E), params["ln2_g"], params["ln2_b"]).reshape(S, B, E)
    x = x + ref_mha(xn / scale, memory, memory, params["ca"], None, H)
    xn = ref_layernorm(x.reshape(-1, E), params["ln3_g"], params["ln3_b"])
    h = jnp.maximum(xn @ params["ff_w1"] + params["ff_b1"], 0.0)
    ff = h @ params["ff_w2"] + params["ff_b2"]
    return x + ff.reshape(S, B, E)


# ----------------------------------------------------------------------------
# Parameter init + fusion
# ----------------------------------------------------------------------------
def init_params(key, E, H):
    ks = jax.random.split(key, 10)
    sd = 0.05

    def dense(k, i, o):
        return jax.random.normal(k, (i, o), jnp.float32) * sd

    def attn_params(k0, k1, k2, k3):
        return {
            "wq": dense(k0, E, E), "bq": jnp.zeros((E,), jnp.float32),
            "wk": dense(k1, E, E), "bk": jnp.zeros((E,), jnp.float32),
            "wv": dense(k2, E, E), "bv": jnp.zeros((E,), jnp.float32),
            "wo": dense(k3, E, E), "bo": jnp.zeros((E,), jnp.float32),
        }

    return {
        "sa": attn_params(ks[0], ks[1], ks[2], ks[3]),
        "ca": attn_params(ks[4], ks[5], ks[6], ks[7]),
        "ff_w1": dense(ks[8], E, 4 * E), "ff_b1": jnp.zeros((4 * E,), jnp.float32),
        "ff_w2": dense(ks[9], 4 * E, E), "ff_b2": jnp.zeros((E,), jnp.float32),
        "ln1_g": jnp.ones((E,), jnp.float32), "ln1_b": jnp.zeros((E,), jnp.float32),
        "ln2_g": jnp.ones((E,), jnp.float32), "ln2_b": jnp.zeros((E,), jnp.float32),
        "ln3_g": jnp.ones((E,), jnp.float32), "ln3_b": jnp.zeros((E,), jnp.float32),
        "scale": math.sqrt(E),
    }


def fuse_params(raw, E, H):
    """Concatenate Q|K|V weights, fold query scales into Wq/bq, cast weights
    to bf16 (biases / LN params stay f32)."""
    dh = E // H
    q_scale = 1.0 / (raw["scale"] * math.sqrt(dh))   # module x/scale + MHA 1/sqrt(Dh)
    b_scale = 1.0 / math.sqrt(dh)

    def fuse_attn(p):
        wq = p["wq"] * q_scale
        bq = p["bq"] * b_scale
        return {
            "wqkv": jnp.concatenate([wq, p["wk"], p["wv"]], axis=1).astype(WGT_DTYPE),
            "bqkv": jnp.concatenate([bq, p["bk"], p["bv"]]),
            "wq": wq.astype(WGT_DTYPE),
            "bq": bq,
            "wkv": jnp.concatenate([p["wk"], p["wv"]], axis=1).astype(WGT_DTYPE),
            "bkv": jnp.concatenate([p["bk"], p["bv"]]),
            "wo": p["wo"].astype(WGT_DTYPE),
            "bo": p["bo"],
        }

    return {
        "sa": fuse_attn(raw["sa"]),
        "ca": fuse_attn(raw["ca"]),
        "ff_w1": raw["ff_w1"].astype(WGT_DTYPE), "ff_b1": raw["ff_b1"],
        "ff_w2": raw["ff_w2"].astype(WGT_DTYPE), "ff_b2": raw["ff_b2"],
        "ln1_g": raw["ln1_g"], "ln1_b": raw["ln1_b"],
        "ln2_g": raw["ln2_g"], "ln2_b": raw["ln2_b"],
        "ln3_g": raw["ln3_g"], "ln3_b": raw["ln3_b"],
    }


if __name__ == "__main__":
    S_TGT, S_SRC, B, E, H = 8, 16, 2, 32, 4

    root = jax.random.PRNGKey(0)
    kx, kmem, kp = jax.random.split(root, 3)
    x = jax.random.normal(kx, (S_TGT, B, E), jnp.float32)
    memory = jax.random.normal(kmem, (S_SRC, B, E), jnp.float32)
    raw_params = init_params(kp, E, H)
    params = fuse_params(raw_params, E, H)

    fwd = jax.jit(functools.partial(decoder_layer_forward, num_heads=H))
    out = jax.block_until_ready(fwd(x, memory, params))

    # Reference: f32, explicit additive causal mask (the Pallas kernel builds
    # the same causal mask in-kernel from iota).
    causal_bool = jnp.triu(jnp.ones((S_TGT, S_TGT), jnp.bool_), k=1)
    tgt_mask = jnp.where(causal_bool, -jnp.inf, 0.0).astype(jnp.float32)
    ref = ref_forward(x, memory, raw_params, tgt_mask, H)

    assert out.shape == (S_TGT, B, E)
    max_err = float(jnp.max(jnp.abs(out - ref)))
    # bf16 MXU operands / bf16 attention hand-offs -> tolerance looser than f32
    assert jnp.allclose(out, ref, atol=3e-2, rtol=3e-2), \
        f"Pallas output mismatch vs reference (max abs err {max_err:.2e})"

    print("KERNEL_OK")
</pallas_src>

<mosaic_0001>
module attributes {stable_mosaic.version = 11 : i64} {
  func.func @flash_attention_kernel(%arg0: i32, %arg1: i32, %arg2: i32, %arg3: memref<1x8x8xbf16, #tpu.memory_space<vmem>>, %arg4: memref<1x8x8xbf16, #tpu.memory_space<vmem>>, %arg5: memref<1x8x8xbf16, #tpu.memory_space<vmem>>, %arg6: memref<1x8x8xbf16, #tpu.memory_space<vmem>>, %arg7: memref<8x1xf32, #tpu.memory_space<vmem>>, %arg8: memref<8x1xf32, #tpu.memory_space<vmem>>, %arg9: memref<8x8xf32, #tpu.memory_space<vmem>>) attributes {dimension_semantics = [#tpu.dimension_semantics<parallel>, #tpu.dimension_semantics<parallel>, #tpu.dimension_semantics<arbitrary>], iteration_bounds = array<i64: 8, 1, 1>, scalar_prefetch = 0 : i64, scratch_operands = 3 : i64, tpu.core_type = #tpu.core_type<tc>, window_params = [{transform_indices = @transform_0, window_bounds = array<i64: 1, 8, 8>}, {transform_indices = @transform_1, window_bounds = array<i64: 1, 8, 8>}, {transform_indices = @transform_2, window_bounds = array<i64: 1, 8, 8>}, {transform_indices = @transform_3, window_bounds = array<i64: 1, 8, 8>}]} {
    %c0_i32 = arith.constant 0 : i32
    %0 = arith.cmpi eq, %arg2, %c0_i32 : i32
    %1 = arith.extui %0 : i1 to i32
    %c0_i32_0 = arith.constant 0 : i32
    %2 = arith.cmpi ne, %1, %c0_i32_0 : i32
    scf.if %2 {
      %cst = arith.constant -1.000000e+30 : f32
      %12 = vector.broadcast %cst : f32 to vector<8x1xf32>
      %c0 = arith.constant 0 : index
      %c0_5 = arith.constant 0 : index
      %13 = vector.load %arg7[%c0, %c0_5] : memref<8x1xf32, #tpu.memory_space<vmem>>, vector<8x1xf32>
      tpu.vector_store %arg7[%c0, %c0_5], %12 {strides = array<i32>} : memref<8x1xf32, #tpu.memory_space<vmem>>, vector<8x1xf32>,
      %cst_6 = arith.constant 0.000000e+00 : f32
      %14 = vector.broadcast %cst_6 : f32 to vector<8x1xf32>
      %c0_7 = arith.constant 0 : index
      %c0_8 = arith.constant 0 : index
      %15 = vector.load %arg8[%c0_7, %c0_8] : memref<8x1xf32, #tpu.memory_space<vmem>>, vector<8x1xf32>
      tpu.vector_store %arg8[%c0_7, %c0_8], %14 {strides = array<i32>} : memref<8x1xf32, #tpu.memory_space<vmem>>, vector<8x1xf32>,
      %cst_9 = arith.constant 0.000000e+00 : f32
      %16 = vector.broadcast %cst_9 : f32 to vector<8x8xf32>
      %c0_10 = arith.constant 0 : index
      %c0_11 = arith.constant 0 : index
      %17 = vector.load %arg9[%c0_10, %c0_11] : memref<8x8xf32, #tpu.memory_space<vmem>>, vector<8x8xf32>
      tpu.vector_store %arg9[%c0_10, %c0_11], %16 {strides = array<i32>} : memref<8x8xf32, #tpu.memory_space<vmem>>, vector<8x8xf32>,
    } else {
    }
    %c8_i32 = arith.constant 8 : i32
    %3 = arith.muli %arg2, %c8_i32 : i32
    %c8_i32_1 = arith.constant 8 : i32
    %4 = arith.muli %arg1, %c8_i32_1 : i32
    %c7_i32 = arith.constant 7 : i32
    %5 = arith.addi %4, %c7_i32 : i32
    %6 = arith.cmpi sle, %3, %5 : i32
    %7 = arith.extui %6 : i1 to i32
    %c0_i32_2 = arith.constant 0 : i32
    %8 = arith.cmpi ne, %7, %c0_i32_2 : i32
    scf.if %8 {
      %c0 = arith.constant 0 : index
      %c0_5 = arith.constant 0 : index
      %c0_6 = arith.constant 0 : index
      %12 = vector.load %arg3[%c0, %c0_5, %c0_6] : memref<1x8x8xbf16, #tpu.memory_space<vmem>>, vector<1x8x8xbf16>
      %13 = vector.shape_cast %12 : vector<1x8x8xbf16> to vector<8x8xbf16>
      %c0_7 = arith.constant 0 : index
      %c0_8 = arith.constant 0 : index
      %c0_9 = arith.constant 0 : index
      %14 = vector.load %arg4[%c0_7, %c0_8, %c0_9] : memref<1x8x8xbf16, #tpu.memory_space<vmem>>, vector<1x8x8xbf16>
      %15 = vector.shape_cast %14 : vector<1x8x8xbf16> to vector<8x8xbf16>
      %c0_10 = arith.constant 0 : index
      %c0_11 = arith.constant 0 : index
      %c0_12 = arith.constant 0 : index
      %16 = vector.load %arg5[%c0_10, %c0_11, %c0_12] : memref<1x8x8xbf16, #tpu.memory_space<vmem>>, vector<1x8x8xbf16>
      %17 = vector.shape_cast %16 : vector<1x8x8xbf16> to vector<8x8xbf16>
      %cst = arith.constant dense<0.000000e+00> : vector<8x8xf32>
      %18 = tpu.matmul %13, %15, %cst {dimension_numbers = #tpu.dot_dimension_numbers<[1], [1], [0], [0], [0, 0, 1, 0], [], []>} : vector<8x8xbf16>, vector<8x8xbf16>, vector<8x8xf32> -> vector<8x8xf32>
      %c8_i32_13 = arith.constant 8 : i32
      %19 = arith.muli %arg1, %c8_i32_13 : i32
      %20 = tpu.iota {dimensions = array<i32: 0>} : vector<8x8xi32>
      %21 = vector.broadcast %19 : i32 to vector<8x8xi32>
      %22 = arith.addi %21, %20 : vector<8x8xi32>
      %c8_i32_14 = arith.constant 8 : i32
      %23 = arith.muli %arg2, %c8_i32_14 : i32
      %24 = tpu.iota {dimensions = array<i32: 1>} : vector<8x8xi32>
      %25 = vector.broadcast %23 : i32 to vector<8x8xi32>
      %26 = arith.addi %25, %24 : vector<8x8xi32>
      %27 = arith.cmpi sgt, %26, %22 : vector<8x8xi32>
      %cst_15 = arith.constant -1.000000e+30 : f32
      %28 = vector.broadcast %cst_15 : f32 to vector<8x8xf32>
      %29 = arith.select %27, %28, %18 : vector<8x8xi1>, vector<8x8xf32>
      %c0_16 = arith.constant 0 : index
      %c0_17 = arith.constant 0 : index
      %30 = vector.load %arg7[%c0_16, %c0_17] : memref<8x1xf32, #tpu.memory_space<vmem>>, vector<8x1xf32>
      %cst_18 = arith.constant dense<0xFF800000> : vector<8xf32>
      %31 = vector.multi_reduction <maximumf>, %29, %cst_18 [1] : vector<8x8xf32> to vector<8xf32>
      %32 = vector.shape_cast %31 : vector<8xf32> to vector<8x1xf32>
      %33 = arith.maximumf %30, %32 : vector<8x1xf32>
      %34 = arith.subf %30, %33 : vector<8x1xf32>
      %35 = math.exp %34 : vector<8x1xf32>
      %36 = vector.broadcast %33 : vector<8x1xf32> to vector<8x8xf32>
      %37 = arith.subf %29, %36 : vector<8x8xf32>
      %38 = math.exp %37 : vector<8x8xf32>
      %c0_19 = arith.constant 0 : index
      %c0_20 = arith.constant 0 : index
      %39 = vector.load %arg8[%c0_19, %c0_20] : memref<8x1xf32, #tpu.memory_space<vmem>>, vector<8x1xf32>
      %40 = arith.mulf %35, %39 : vector<8x1xf32>
      %cst_21 = arith.constant dense<0.000000e+00> : vector<8xf32>
      %41 = vector.multi_reduction <add>, %38, %cst_21 [1] : vector<8x8xf32> to vector<8xf32>
      %42 = vector.shape_cast %41 : vector<8xf32> to vector<8x1xf32>
      %43 = arith.addf %40, %42 : vector<8x1xf32>
      %c0_22 = arith.constant 0 : index
      %c0_23 = arith.constant 0 : index
      %44 = vector.load %arg8[%c0_22, %c0_23] : memref<8x1xf32, #tpu.memory_space<vmem>>, vector<8x1xf32>
      tpu.vector_store %arg8[%c0_22, %c0_23], %43 {strides = array<i32>} : memref<8x1xf32, #tpu.memory_space<vmem>>, vector<8x1xf32>,
      %c0_24 = arith.constant 0 : index
      %c0_25 = arith.constant 0 : index
      %45 = vector.load %arg9[%c0_24, %c0_25] : memref<8x8xf32, #tpu.memory_space<vmem>>, vector<8x8xf32>
      %46 = vector.broadcast %35 : vector<8x1xf32> to vector<8x8xf32>
      %47 = arith.mulf %46, %45 : vector<8x8xf32>
      %48 = arith.truncf %38 : vector<8x8xf32> to vector<8x8xbf16>
      %cst_26 = arith.constant dense<0.000000e+00> : vector<8x8xf32>
      %49 = tpu.matmul %48, %17, %cst_26 {dimension_numbers = #tpu.dot_dimension_numbers<[1], [0], [0], [1], [0, 0, 1, 1], [], []>} : vector<8x8xbf16>, vector<8x8xbf16>, vector<8x8xf32> -> vector<8x8xf32>
      %50 = arith.addf %47, %49 : vector<8x8xf32>
      %c0_27 = arith.constant 0 : index
      %c0_28 = arith.constant 0 : index
      %51 = vector.load %arg9[%c0_27, %c0_28] : memref<8x8xf32, #tpu.memory_space<vmem>>, vector<8x8xf32>
      tpu.vector_store %arg9[%c0_27, %c0_28], %50 {strides = array<i32>} : memref<8x8xf32, #tpu.memory_space<vmem>>, vector<8x8xf32>,
      %c0_29 = arith.constant 0 : index
      %c0_30 = arith.constant 0 : index
      %52 = vector.load %arg7[%c0_29, %c0_30] : memref<8x1xf32, #tpu.memory_space<vmem>>, vector<8x1xf32>
      tpu.vector_store %arg7[%c0_29, %c0_30], %33 {strides = array<i32>} : memref<8x1xf32, #tpu.memory_space<vmem>>, vector<8x1xf32>,
    } else {
    }
    %c0_i32_3 = arith.constant 0 : i32
    %9 = arith.cmpi eq, %arg2, %c0_i32_3 : i32
    %10 = arith.extui %9 : i1 to i32
    %c0_i32_4 = arith.constant 0 : i32
    %11 = arith.cmpi ne, %10, %c0_i32_4 : i32
    scf.if %11 {
      %c0 = arith.constant 0 : index
      %c0_5 = arith.constant 0 : index
      %12 = vector.load %arg9[%c0, %c0_5] : memref<8x8xf32, #tpu.memory_space<vmem>>, vector<8x8xf32>
      %c0_6 = arith.constant 0 : index
      %c0_7 = arith.constant 0 : index
      %13 = vector.load %arg8[%c0_6, %c0_7] : memref<8x1xf32, #tpu.memory_space<vmem>>, vector<8x1xf32>
      %14 = tpu.reciprocal %13 {approx = true} : vector<8x1xf32> -> vector<8x1xf32>
      %15 = vector.broadcast %14 : vector<8x1xf32> to vector<8x8xf32>
      %16 = arith.mulf %12, %15 : vector<8x8xf32>
      %17 = arith.truncf %16 : vector<8x8xf32> to vector<8x8xbf16>
      %c0_8 = arith.constant 0 : index
      %c0_9 = arith.constant 0 : index
      %c0_10 = arith.constant 0 : index
      %18 = vector.load %arg6[%c0_8, %c0_9, %c0_10] : memref<1x8x8xbf16, #tpu.memory_space<vmem>>, vector<1x8x8xbf16>
      %19 = vector.shape_cast %18 : vector<1x8x8xbf16> to vector<8x8xbf16>
      %20 = vector.shape_cast %17 : vector<8x8xbf16> to vector<1x8x8xbf16>
      tpu.vector_store %arg6[%c0_8, %c0_9, %c0_10], %20 {strides = array<i32>} : memref<1x8x8xbf16, #tpu.memory_space<vmem>>, vector<1x8x8xbf16>,
    } else {
    }
    return
  }
  func.func @transform_0(%arg0: i32, %arg1: i32, %arg2: i32) -> (i32, i32, i32) {
    %c0_i32 = arith.constant 0 : i32
    %c0_i32_0 = arith.constant 0 : i32
    return %arg0, %arg1, %c0_i32 : i32, i32, i32
  }
  func.func @transform_1(%arg0: i32, %arg1: i32, %arg2: i32) -> (i32, i32, i32) {
    %c0_i32 = arith.constant 0 : i32
    %c0_i32_0 = arith.constant 0 : i32
    return %arg0, %arg2, %c0_i32 : i32, i32, i32
  }
  func.func @transform_2(%arg0: i32, %arg1: i32, %arg2: i32) -> (i32, i32, i32) {
    %c0_i32 = arith.constant 0 : i32
    %c0_i32_0 = arith.constant 0 : i32
    return %arg0, %arg2, %c0_i32 : i32, i32, i32
  }
  func.func @transform_3(%arg0: i32, %arg1: i32, %arg2: i32) -> (i32, i32, i32) {
    %c0_i32 = arith.constant 0 : i32
    %c0_i32_0 = arith.constant 0 : i32
    return %arg0, %arg1, %c0_i32 : i32, i32, i32
  }
}

module attributes {stable_mosaic.version = 11 : i64} {
  func.func @head_merge_proj_residual_kernel(%arg0: i32, %arg1: i32, %arg2: memref<4x8x8xbf16, #tpu.memory_space<vmem>>, %arg3: memref<32x32xbf16, #tpu.memory_space<vmem>>, %arg4: memref<1x32xf32, #tpu.memory_space<vmem>>, %arg5: memref<1x8x32xf32, #tpu.memory_space<vmem>>, %arg6: memref<1x8x32xf32, #tpu.memory_space<vmem>>) attributes {dimension_semantics = [#tpu.dimension_semantics<parallel>, #tpu.dimension_semantics<parallel>], iteration_bounds = array<i64: 2, 1>, scalar_prefetch = 0 : i64, scratch_operands = 0 : i64, tpu.core_type = #tpu.core_type<tc>, window_params = [{transform_indices = @transform_0, window_bounds = array<i64: 4, 8, 8>}, {pipeline_mode = #tpu.pipeline_mode<synchronous>, transform_indices = @transform_1, window_bounds = array<i64: 32, 32>}, {pipeline_mode = #tpu.pipeline_mode<synchronous>, transform_indices = @transform_2, window_bounds = array<i64: 1, 32>}, {transform_indices = @transform_3, window_bounds = array<i64: 1, 8, 32>}, {transform_indices = @transform_4, window_bounds = array<i64: 1, 8, 32>}]} {
    %c0 = arith.constant 0 : index
    %c0_0 = arith.constant 0 : index
    %c0_1 = arith.constant 0 : index
    %0 = vector.load %arg2[%c0, %c0_0, %c0_1] : memref<4x8x8xbf16, #tpu.memory_space<vmem>>, vector<1x8x8xbf16>
    %1 = vector.shape_cast %0 : vector<1x8x8xbf16> to vector<8x8xbf16>
    %c1 = arith.constant 1 : index
    %c0_2 = arith.constant 0 : index
    %c0_3 = arith.constant 0 : index
    %2 = vector.load %arg2[%c1, %c0_2, %c0_3] : memref<4x8x8xbf16, #tpu.memory_space<vmem>>, vector<1x8x8xbf16>
    %3 = vector.shape_cast %2 : vector<1x8x8xbf16> to vector<8x8xbf16>
    %c2 = arith.constant 2 : index
    %c0_4 = arith.constant 0 : index
    %c0_5 = arith.constant 0 : index
    %4 = vector.load %arg2[%c2, %c0_4, %c0_5] : memref<4x8x8xbf16, #tpu.memory_space<vmem>>, vector<1x8x8xbf16>
    %5 = vector.shape_cast %4 : vector<1x8x8xbf16> to vector<8x8xbf16>
    %c3 = arith.constant 3 : index
    %c0_6 = arith.constant 0 : index
    %c0_7 = arith.constant 0 : index
    %6 = vector.load %arg2[%c3, %c0_6, %c0_7] : memref<4x8x8xbf16, #tpu.memory_space<vmem>>, vector<1x8x8xbf16>
    %7 = vector.shape_cast %6 : vector<1x8x8xbf16> to vector<8x8xbf16>
    %8 = tpu.concatenate %1, %3, %5, %7 in 1 : vector<8x8xbf16>, vector<8x8xbf16>, vector<8x8xbf16>, vector<8x8xbf16> -> vector<8x32xbf16>
    %c0_8 = arith.constant 0 : index
    %c0_9 = arith.constant 0 : index
    %9 = vector.load %arg3[%c0_8, %c0_9] : memref<32x32xbf16, #tpu.memory_space<vmem>>, vector<32x32xbf16>
    %cst = arith.constant dense<0.000000e+00> : vector<8x32xf32>
    %10 = tpu.matmul %8, %9, %cst {dimension_numbers = #tpu.dot_dimension_numbers<[1], [0], [0], [1], [0, 0, 1, 1], [], []>} : vector<8x32xbf16>, vector<32x32xbf16>, vector<8x32xf32> -> vector<8x32xf32>
    %c0_10 = arith.constant 0 : index
    %c0_11 = arith.constant 0 : index
    %c0_12 = arith.constant 0 : index
    %11 = vector.load %arg5[%c0_10, %c0_11, %c0_12] : memref<1x8x32xf32, #tpu.memory_space<vmem>>, vector<1x8x32xf32>
    %12 = vector.shape_cast %11 : vector<1x8x32xf32> to vector<8x32xf32>
    %13 = arith.addf %12, %10 : vector<8x32xf32>
    %c0_13 = arith.constant 0 : index
    %c0_14 = arith.constant 0 : index
    %14 = vector.load %arg4[%c0_13, %c0_14] : memref<1x32xf32, #tpu.memory_space<vmem>>, vector<1x32xf32>
    %15 = vector.broadcast %14 : vector<1x32xf32> to vector<8x32xf32>
    %16 = arith.addf %13, %15 : vector<8x32xf32>
    %c0_15 = arith.constant 0 : index
    %c0_16 = arith.constant 0 : index
    %c0_17 = arith.constant 0 : index
    %17 = vector.load %arg6[%c0_15, %c0_16, %c0_17] : memref<1x8x32xf32, #tpu.memory_space<vmem>>, vector<1x8x32xf32>
    %18 = vector.shape_cast %17 : vector<1x8x32xf32> to vector<8x32xf32>
    %19 = vector.shape_cast %16 : vector<8x32xf32> to vector<1x8x32xf32>
    tpu.vector_store %arg6[%c0_15, %c0_16, %c0_17], %19 {strides = array<i32>} : memref<1x8x32xf32, #tpu.memory_space<vmem>>, vector<1x8x32xf32>,
    return
  }
  func.func @transform_0(%arg0: i32, %arg1: i32) -> (i32, i32, i32) {
    %c0_i32 = arith.constant 0 : i32
    %c0_i32_0 = arith.constant 0 : i32
    return %arg0, %arg1, %c0_i32 : i32, i32, i32
  }
  func.func @transform_1(%arg0: i32, %arg1: i32) -> (i32, i32) {
    %c0_i32 = arith.constant 0 : i32
    %c0_i32_0 = arith.constant 0 : i32
    %c0_i32_1 = arith.constant 0 : i32
    return %c0_i32, %c0_i32_0 : i32, i32
  }
  func.func @transform_2(%arg0: i32, %arg1: i32) -> (i32, i32) {
    %c0_i32 = arith.constant 0 : i32
    %c0_i32_0 = arith.constant 0 : i32
    %c0_i32_1 = arith.constant 0 : i32
    return %c0_i32, %c0_i32_0 : i32, i32
  }
  func.func @transform_3(%arg0: i32, %arg1: i32) -> (i32, i32, i32) {
    %c0_i32 = arith.constant 0 : i32
    %c0_i32_0 = arith.constant 0 : i32
    return %arg0, %arg1, %c0_i32 : i32, i32, i32
  }
  func.func @transform_4(%arg0: i32, %arg1: i32) -> (i32, i32, i32) {
    %c0_i32 = arith.constant 0 : i32
    %c0_i32_0 = arith.constant 0 : i32
    return %arg0, %arg1, %c0_i32 : i32, i32, i32
  }
}

module attributes {stable_mosaic.version = 11 : i64} {
  func.func @ln_proj_heads_kernel(%arg0: i32, %arg1: i32, %arg2: memref<1x8x32xf32, #tpu.memory_space<vmem>>, %arg3: memref<1x32xf32, #tpu.memory_space<vmem>>, %arg4: memref<1x32xf32, #tpu.memory_space<vmem>>, %arg5: memref<32x96xbf16, #tpu.memory_space<vmem>>, %arg6: memref<1x96xf32, #tpu.memory_space<vmem>>, %arg7: memref<4x8x8xbf16, #tpu.memory_space<vmem>>, %arg8: memref<4x8x8xbf16, #tpu.memory_space<vmem>>, %arg9: memref<4x8x8xbf16, #tpu.memory_space<vmem>>) attributes {dimension_semantics = [#tpu.dimension_semantics<parallel>, #tpu.dimension_semantics<parallel>], iteration_bounds = array<i64: 2, 1>, scalar_prefetch = 0 : i64, scratch_operands = 0 : i64, tpu.core_type = #tpu.core_type<tc>, window_params = [{transform_indices = @transform_0, window_bounds = array<i64: 1, 8, 32>}, {pipeline_mode = #tpu.pipeline_mode<synchronous>, transform_indices = @transform_1, window_bounds = array<i64: 1, 32>}, {pipeline_mode = #tpu.pipeline_mode<synchronous>, transform_indices = @transform_2, window_bounds = array<i64: 1, 32>}, {pipeline_mode = #tpu.pipeline_mode<synchronous>, transform_indices = @transform_3, window_bounds = array<i64: 32, 96>}, {pipeline_mode = #tpu.pipeline_mode<synchronous>, transform_indices = @transform_4, window_bounds = array<i64: 1, 96>}, {transform_indices = @transform_5, window_bounds = array<i64: 4, 8, 8>}, {transform_indices = @transform_6, window_bounds = array<i64: 4, 8, 8>}, {transform_indices = @transform_7, window_bounds = array<i64: 4, 8, 8>}]} {
    %c0 = arith.constant 0 : index
    %c0_0 = arith.constant 0 : index
    %c0_1 = arith.constant 0 : index
    %0 = vector.load %arg2[%c0, %c0_0, %c0_1] : memref<1x8x32xf32, #tpu.memory_space<vmem>>, vector<1x8x32xf32>
    %1 = vector.shape_cast %0 : vector<1x8x32xf32> to vector<8x32xf32>
    %c0_2 = arith.constant 0 : index
    %c0_3 = arith.constant 0 : index
    %2 = vector.load %arg3[%c0_2, %c0_3] : memref<1x32xf32, #tpu.memory_space<vmem>>, vector<1x32xf32>
    %c0_4 = arith.constant 0 : index
    %c0_5 = arith.constant 0 : index
    %3 = vector.load %arg4[%c0_4, %c0_5] : memref<1x32xf32, #tpu.memory_space<vmem>>, vector<1x32xf32>
    %cst = arith.constant dense<0.000000e+00> : vector<8xf32>
    %4 = vector.multi_reduction <add>, %1, %cst [1] : vector<8x32xf32> to vector<8xf32>
    %5 = vector.shape_cast %4 : vector<8xf32> to vector<8x1xf32>
    %cst_6 = arith.constant 3.200000e+01 : f32
    %6 = vector.broadcast %cst_6 : f32 to vector<8x1xf32>
    %7 = arith.divf %5, %6 : vector<8x1xf32>
    %8 = vector.broadcast %7 : vector<8x1xf32> to vector<8x32xf32>
    %9 = arith.subf %1, %8 : vector<8x32xf32>
    %10 = arith.mulf %9, %9 : vector<8x32xf32>
    %cst_7 = arith.constant dense<0.000000e+00> : vector<8xf32>
    %11 = vector.multi_reduction <add>, %10, %cst_7 [1] : vector<8x32xf32> to vector<8xf32>
    %12 = vector.shape_cast %11 : vector<8xf32> to vector<8x1xf32>
    %cst_8 = arith.constant 3.200000e+01 : f32
    %13 = vector.broadcast %cst_8 : f32 to vector<8x1xf32>
    %14 = arith.divf %12, %13 : vector<8x1xf32>
    %15 = vector.broadcast %7 : vector<8x1xf32> to vector<8x32xf32>
    %16 = arith.subf %1, %15 : vector<8x32xf32>
    %cst_9 = arith.constant 9.99999974E-6 : f32
    %17 = vector.broadcast %cst_9 : f32 to vector<8x1xf32>
    %18 = arith.addf %14, %17 : vector<8x1xf32>
    %19 = math.rsqrt %18 : vector<8x1xf32>
    %20 = vector.broadcast %19 : vector<8x1xf32> to vector<8x32xf32>
    %21 = arith.mulf %16, %20 : vector<8x32xf32>
    %22 = vector.broadcast %2 : vector<1x32xf32> to vector<8x32xf32>
    %23 = arith.mulf %21, %22 : vector<8x32xf32>
    %24 = vector.broadcast %3 : vector<1x32xf32> to vector<8x32xf32>
    %25 = arith.addf %23, %24 : vector<8x32xf32>
    %26 = arith.truncf %25 : vector<8x32xf32> to vector<8x32xbf16>
    %c0_10 = arith.constant 0 : index
    %c0_11 = arith.constant 0 : index
    %27 = vector.load %arg5[%c0_10, %c0_11] : memref<32x96xbf16, #tpu.memory_space<vmem>>, vector<32x96xbf16>
    %cst_12 = arith.constant dense<0.000000e+00> : vector<8x96xf32>
    %28 = tpu.matmul %26, %27, %cst_12 {dimension_numbers = #tpu.dot_dimension_numbers<[1], [0], [0], [1], [0, 0, 1, 1], [], []>} : vector<8x32xbf16>, vector<32x96xbf16>, vector<8x96xf32> -> vector<8x96xf32>
    %c0_13 = arith.constant 0 : index
    %c0_14 = arith.constant 0 : index
    %29 = vector.load %arg6[%c0_13, %c0_14] : memref<1x96xf32, #tpu.memory_space<vmem>>, vector<1x96xf32>
    %30 = vector.broadcast %29 : vector<1x96xf32> to vector<8x96xf32>
    %31 = arith.addf %28, %30 : vector<8x96xf32>
    %32 = vector.extract_strided_slice %31 {offsets = [0, 0], sizes = [8, 32], strides = [1, 1]} : vector<8x96xf32> to vector<8x32xf32>
    %33 = vector.extract_strided_slice %32 {offsets = [0, 0], sizes = [8, 8], strides = [1, 1]} : vector<8x32xf32> to vector<8x8xf32>
    %34 = arith.truncf %33 : vector<8x8xf32> to vector<8x8xbf16>
    %c0_15 = arith.constant 0 : index
    %c0_16 = arith.constant 0 : index
    %c0_17 = arith.constant 0 : index
    %35 = vector.load %arg7[%c0_15, %c0_16, %c0_17] : memref<4x8x8xbf16, #tpu.memory_space<vmem>>, vector<1x8x8xbf16>
    %36 = vector.shape_cast %35 : vector<1x8x8xbf16> to vector<8x8xbf16>
    %37 = vector.shape_cast %34 : vector<8x8xbf16> to vector<1x8x8xbf16>
    tpu.vector_store %arg7[%c0_15, %c0_16, %c0_17], %37 {strides = array<i32>} : memref<4x8x8xbf16, #tpu.memory_space<vmem>>, vector<1x8x8xbf16>,
    %38 = vector.extract_strided_slice %32 {offsets = [0, 8], sizes = [8, 8], strides = [1, 1]} : vector<8x32xf32> to vector<8x8xf32>
    %39 = arith.truncf %38 : vector<8x8xf32> to vector<8x8xbf16>
    %c1 = arith.constant 1 : index
    %c0_18 = arith.constant 0 : index
    %c0_19 = arith.constant 0 : index
    %40 = vector.load %arg7[%c1, %c0_18, %c0_19] : memref<4x8x8xbf16, #tpu.memory_space<vmem>>, vector<1x8x8xbf16>
    %41 = vector.shape_cast %40 : vector<1x8x8xbf16> to vector<8x8xbf16>
    %42 = vector.shape_cast %39 : vector<8x8xbf16> to vector<1x8x8xbf16>
    tpu.vector_store %arg7[%c1, %c0_18, %c0_19], %42 {strides = array<i32>} : memref<4x8x8xbf16, #tpu.memory_space<vmem>>, vector<1x8x8xbf16>,
    %43 = vector.extract_strided_slice %32 {offsets = [0, 16], sizes = [8, 8], strides = [1, 1]} : vector<8x32xf32> to vector<8x8xf32>
    %44 = arith.truncf %43 : vector<8x8xf32> to vector<8x8xbf16>
    %c2 = arith.constant 2 : index
    %c0_20 = arith.constant 0 : index
    %c0_21 = arith.constant 0 : index
    %45 = vector.load %arg7[%c2, %c0_20, %c0_21] : memref<4x8x8xbf16, #tpu.memory_space<vmem>>, vector<1x8x8xbf16>
    %46 = vector.shape_cast %45 : vector<1x8x8xbf16> to vector<8x8xbf16>
    %47 = vector.shape_cast %44 : vector<8x8xbf16> to vector<1x8x8xbf16>
    tpu.vector_store %arg7[%c2, %c0_20, %c0_21], %47 {strides = array<i32>} : memref<4x8x8xbf16, #tpu.memory_space<vmem>>, vector<1x8x8xbf16>,
    %48 = vector.extract_strided_slice %32 {offsets = [0, 24], sizes = [8, 8], strides = [1, 1]} : vector<8x32xf32> to vector<8x8xf32>
    %49 = arith.truncf %48 : vector<8x8xf32> to vector<8x8xbf16>
    %c3 = arith.constant 3 : index
    %c0_22 = arith.constant 0 : index
    %c0_23 = arith.constant 0 : index
    %50 = vector.load %arg7[%c3, %c0_22, %c0_23] : memref<4x8x8xbf16, #tpu.memory_space<vmem>>, vector<1x8x8xbf16>
    %51 = vector.shape_cast %50 : vector<1x8x8xbf16> to vector<8x8xbf16>
    %52 = vector.shape_cast %49 : vector<8x8xbf16> to vector<1x8x8xbf16>
    tpu.vector_store %arg7[%c3, %c0_22, %c0_23], %52 {strides = array<i32>} : memref<4x8x8xbf16, #tpu.memory_space<vmem>>, vector<1x8x8xbf16>,
    %53 = vector.extract_strided_slice %31 {offsets = [0, 32], sizes = [8, 32], strides = [1, 1]} : vector<8x96xf32> to vector<8x32xf32>
    %54 = vector.extract_strided_slice %53 {offsets = [0, 0], sizes = [8, 8], strides = [1, 1]} : vector<8x32xf32> to vector<8x8xf32>
    %55 = arith.truncf %54 : vector<8x8xf32> to vector<8x8xbf16>
    %c0_24 = arith.constant 0 : index
    %c0_25 = arith.constant 0 : index
    %c0_26 = arith.constant 0 : index
    %56 = vector.load %arg8[%c0_24, %c0_25, %c0_26] : memref<4x8x8xbf16, #tpu.memory_space<vmem>>, vector<1x8x8xbf16>
    %57 = vector.shape_cast %56 : vector<1x8x8xbf16> to vector<8x8xbf16>
    %58 = vector.shape_cast %55 : vector<8x8xbf16> to vector<1x8x8xbf16>
    tpu.vector_store %arg8[%c0_24, %c0_25, %c0_26], %58 {strides = array<i32>} : memref<4x8x8xbf16, #tpu.memory_space<vmem>>, vector<1x8x8xbf16>,
    %59 = vector.extract_strided_slice %53 {offsets = [0, 8], sizes = [8, 8], strides = [1, 1]} : vector<8x32xf32> to vector<8x8xf32>
    %60 = arith.truncf %59 : vector<8x8xf32> to vector<8x8xbf16>
    %c1_27 = arith.constant 1 : index
    %c0_28 = arith.constant 0 : index
    %c0_29 = arith.constant 0 : index
    %61 = vector.load %arg8[%c1_27, %c0_28, %c0_29] : memref<4x8x8xbf16, #tpu.memory_space<vmem>>, vector<1x8x8xbf16>
    %62 = vector.shape_cast %61 : vector<1x8x8xbf16> to vector<8x8xbf16>
    %63 = vector.shape_cast %60 : vector<8x8xbf16> to vector<1x8x8xbf16>
    tpu.vector_store %arg8[%c1_27, %c0_28, %c0_29], %63 {strides = array<i32>} : memref<4x8x8xbf16, #tpu.memory_space<vmem>>, vector<1x8x8xbf16>,
    %64 = vector.extract_strided_slice %53 {offsets = [0, 16], sizes = [8, 8], strides = [1, 1]} : vector<8x32xf32> to vector<8x8xf32>
    %65 = arith.truncf %64 : vector<8x8xf32> to vector<8x8xbf16>
    %c2_30 = arith.constant 2 : index
    %c0_31 = arith.constant 0 : index
    %c0_32 = arith.constant 0 : index
    %66 = vector.load %arg8[%c2_30, %c0_31, %c0_32] : memref<4x8x8xbf16, #tpu.memory_space<vmem>>, vector<1x8x8xbf16>
    %67 = vector.shape_cast %66 : vector<1x8x8xbf16> to vector<8x8xbf16>
    %68 = vector.shape_cast %65 : vector<8x8xbf16> to vector<1x8x8xbf16>
    tpu.vector_store %arg8[%c2_30, %c0_31, %c0_32], %68 {strides = array<i32>} : memref<4x8x8xbf16, #tpu.memory_space<vmem>>, vector<1x8x8xbf16>,
    %69 = vector.extract_strided_slice %53 {offsets = [0, 24], sizes = [8, 8], strides = [1, 1]} : vector<8x32xf32> to vector<8x8xf32>
    %70 = arith.truncf %69 : vector<8x8xf32> to vector<8x8xbf16>
    %c3_33 = arith.constant 3 : index
    %c0_34 = arith.constant 0 : index
    %c0_35 = arith.constant 0 : index
    %71 = vector.load %arg8[%c3_33, %c0_34, %c0_35] : memref<4x8x8xbf16, #tpu.memory_space<vmem>>, vector<1x8x8xbf16>
    %72 = vector.shape_cast %71 : vector<1x8x8xbf16> to vector<8x8xbf16>
    %73 = vector.shape_cast %70 : vector<8x8xbf16> to vector<1x8x8xbf16>
    tpu.vector_store %arg8[%c3_33, %c0_34, %c0_35], %73 {strides = array<i32>} : memref<4x8x8xbf16, #tpu.memory_space<vmem>>, vector<1x8x8xbf16>,
    %74 = vector.extract_strided_slice %31 {offsets = [0, 64], sizes = [8, 32], strides = [1, 1]} : vector<8x96xf32> to vector<8x32xf32>
    %75 = vector.extract_strided_slice %74 {offsets = [0, 0], sizes = [8, 8], strides = [1, 1]} : vector<8x32xf32> to vector<8x8xf32>
    %76 = arith.truncf %75 : vector<8x8xf32> to vector<8x8xbf16>
    %c0_36 = arith.constant 0 : index
    %c0_37 = arith.constant 0 : index
    %c0_38 = arith.constant 0 : index
    %77 = vector.load %arg9[%c0_36, %c0_37, %c0_38] : memref<4x8x8xbf16, #tpu.memory_space<vmem>>, vector<1x8x8xbf16>
    %78 = vector.shape_cast %77 : vector<1x8x8xbf16> to vector<8x8xbf16>
    %79 = vector.shape_cast %76 : vector<8x8xbf16> to vector<1x8x8xbf16>
    tpu.vector_store %arg9[%c0_36, %c0_37, %c0_38], %79 {strides = array<i32>} : memref<4x8x8xbf16, #tpu.memory_space<vmem>>, vector<1x8x8xbf16>,
    %80 = vector.extract_strided_slice %74 {offsets = [0, 8], sizes = [8, 8], strides = [1, 1]} : vector<8x32xf32> to vector<8x8xf32>
    %81 = arith.truncf %80 : vector<8x8xf32> to vector<8x8xbf16>
    %c1_39 = arith.constant 1 : index
    %c0_40 = arith.constant 0 : index
    %c0_41 = arith.constant 0 : index
    %82 = vector.load %arg9[%c1_39, %c0_40, %c0_41] : memref<4x8x8xbf16, #tpu.memory_space<vmem>>, vector<1x8x8xbf16>
    %83 = vector.shape_cast %82 : vector<1x8x8xbf16> to vector<8x8xbf16>
    %84 = vector.shape_cast %81 : vector<8x8xbf16> to vector<1x8x8xbf16>
    tpu.vector_store %arg9[%c1_39, %c0_40, %c0_41], %84 {strides = array<i32>} : memref<4x8x8xbf16, #tpu.memory_space<vmem>>, vector<1x8x8xbf16>,
    %85 = vector.extract_strided_slice %74 {offsets = [0, 16], sizes = [8, 8], strides = [1, 1]} : vector<8x32xf32> to vector<8x8xf32>
    %86 = arith.truncf %85 : vector<8x8xf32> to vector<8x8xbf16>
    %c2_42 = arith.constant 2 : index
    %c0_43 = arith.constant 0 : index
    %c0_44 = arith.constant 0 : index
    %87 = vector.load %arg9[%c2_42, %c0_43, %c0_44] : memref<4x8x8xbf16, #tpu.memory_space<vmem>>, vector<1x8x8xbf16>
    %88 = vector.shape_cast %87 : vector<1x8x8xbf16> to vector<8x8xbf16>
    %89 = vector.shape_cast %86 : vector<8x8xbf16> to vector<1x8x8xbf16>
    tpu.vector_store %arg9[%c2_42, %c0_43, %c0_44], %89 {strides = array<i32>} : memref<4x8x8xbf16, #tpu.memory_space<vmem>>, vector<1x8x8xbf16>,
    %90 = vector.extract_strided_slice %74 {offsets = [0, 24], sizes = [8, 8], strides = [1, 1]} : vector<8x32xf32> to vector<8x8xf32>
    %91 = arith.truncf %90 : vector<8x8xf32> to vector<8x8xbf16>
    %c3_45 = arith.constant 3 : index
    %c0_46 = arith.constant 0 : index
    %c0_47 = arith.constant 0 : index
    %92 = vector.load %arg9[%c3_45, %c0_46, %c0_47] : memref<4x8x8xbf16, #tpu.memory_space<vmem>>, vector<1x8x8xbf16>
    %93 = vector.shape_cast %92 : vector<1x8x8xbf16> to vector<8x8xbf16>
    %94 = vector.shape_cast %91 : vector<8x8xbf16> to vector<1x8x8xbf16>
    tpu.vector_store %arg9[%c3_45, %c0_46, %c0_47], %94 {strides = array<i32>} : memref<4x8x8xbf16, #tpu.memory_space<vmem>>, vector<1x8x8xbf16>,
    return
  }
  func.func @transform_0(%arg0: i32, %arg1: i32) -> (i32, i32, i32) {
    %c0_i32 = arith.constant 0 : i32
    %c0_i32_0 = arith.constant 0 : i32
    return %arg0, %arg1, %c0_i32 : i32, i32, i32
  }
  func.func @transform_1(%arg0: i32, %arg1: i32) -> (i32, i32) {
    %c0_i32 = arith.constant 0 : i32
    %c0_i32_0 = arith.constant 0 : i32
    %c0_i32_1 = arith.constant 0 : i32
    return %c0_i32, %c0_i32_0 : i32, i32
  }
  func.func @transform_2(%arg0: i32, %arg1: i32) -> (i32, i32) {
    %c0_i32 = arith.constant 0 : i32
    %c0_i32_0 = arith.constant 0 : i32
    %c0_i32_1 = arith.constant 0 : i32
    return %c0_i32, %c0_i32_0 : i32, i32
  }
  func.func @transform_3(%arg0: i32, %arg1: i32) -> (i32, i32) {
    %c0_i32 = arith.constant 0 : i32
    %c0_i32_0 = arith.constant 0 : i32
    %c0_i32_1 = arith.constant 0 : i32
    return %c0_i32, %c0_i32_0 : i32, i32
  }
  func.func @transform_4(%arg0: i32, %arg1: i32) -> (i32, i32) {
    %c0_i32 = arith.constant 0 : i32
    %c0_i32_0 = arith.constant 0 : i32
    %c0_i32_1 = arith.constant 0 : i32
    return %c0_i32, %c0_i32_0 : i32, i32
  }
  func.func @transform_5(%arg0: i32, %arg1: i32) -> (i32, i32, i32) {
    %c0_i32 = arith.constant 0 : i32
    %c0_i32_0 = arith.constant 0 : i32
    return %arg0, %arg1, %c0_i32 : i32, i32, i32
  }
  func.func @transform_6(%arg0: i32, %arg1: i32) -> (i32, i32, i32) {
    %c0_i32 = arith.constant 0 : i32
    %c0_i32_0 = arith.constant 0 : i32
    return %arg0, %arg1, %c0_i32 : i32, i32, i32
  }
  func.func @transform_7(%arg0: i32, %arg1: i32) -> (i32, i32, i32) {
    %c0_i32 = arith.constant 0 : i32
    %c0_i32_0 = arith.constant 0 : i32
    return %arg0, %arg1, %c0_i32 : i32, i32, i32
  }
}

module attributes {stable_mosaic.version = 11 : i64} {
  func.func @ln_proj_heads_kernel(%arg0: i32, %arg1: i32, %arg2: memref<1x8x32xf32, #tpu.memory_space<vmem>>, %arg3: memref<1x32xf32, #tpu.memory_space<vmem>>, %arg4: memref<1x32xf32, #tpu.memory_space<vmem>>, %arg5: memref<32x32xbf16, #tpu.memory_space<vmem>>, %arg6: memref<1x32xf32, #tpu.memory_space<vmem>>, %arg7: memref<4x8x8xbf16, #tpu.memory_space<vmem>>) attributes {dimension_semantics = [#tpu.dimension_semantics<parallel>, #tpu.dimension_semantics<parallel>], iteration_bounds = array<i64: 2, 1>, scalar_prefetch = 0 : i64, scratch_operands = 0 : i64, tpu.core_type = #tpu.core_type<tc>, window_params = [{transform_indices = @transform_0, window_bounds = array<i64: 1, 8, 32>}, {pipeline_mode = #tpu.pipeline_mode<synchronous>, transform_indices = @transform_1, window_bounds = array<i64: 1, 32>}, {pipeline_mode = #tpu.pipeline_mode<synchronous>, transform_indices = @transform_2, window_bounds = array<i64: 1, 32>}, {pipeline_mode = #tpu.pipeline_mode<synchronous>, transform_indices = @transform_3, window_bounds = array<i64: 32, 32>}, {pipeline_mode = #tpu.pipeline_mode<synchronous>, transform_indices = @transform_4, window_bounds = array<i64: 1, 32>}, {transform_indices = @transform_5, window_bounds = array<i64: 4, 8, 8>}]} {
    %c0 = arith.constant 0 : index
    %c0_0 = arith.constant 0 : index
    %c0_1 = arith.constant 0 : index
    %0 = vector.load %arg2[%c0, %c0_0, %c0_1] : memref<1x8x32xf32, #tpu.memory_space<vmem>>, vector<1x8x32xf32>
    %1 = vector.shape_cast %0 : vector<1x8x32xf32> to vector<8x32xf32>
    %c0_2 = arith.constant 0 : index
    %c0_3 = arith.constant 0 : index
    %2 = vector.load %arg3[%c0_2, %c0_3] : memref<1x32xf32, #tpu.memory_space<vmem>>, vector<1x32xf32>
    %c0_4 = arith.constant 0 : index
    %c0_5 = arith.constant 0 : index
    %3 = vector.load %arg4[%c0_4, %c0_5] : memref<1x32xf32, #tpu.memory_space<vmem>>, vector<1x32xf32>
    %cst = arith.constant dense<0.000000e+00> : vector<8xf32>
    %4 = vector.multi_reduction <add>, %1, %cst [1] : vector<8x32xf32> to vector<8xf32>
    %5 = vector.shape_cast %4 : vector<8xf32> to vector<8x1xf32>
    %cst_6 = arith.constant 3.200000e+01 : f32
    %6 = vector.broadcast %cst_6 : f32 to vector<8x1xf32>
    %7 = arith.divf %5, %6 : vector<8x1xf32>
    %8 = vector.broadcast %7 : vector<8x1xf32> to vector<8x32xf32>
    %9 = arith.subf %1, %8 : vector<8x32xf32>
    %10 = arith.mulf %9, %9 : vector<8x32xf32>
    %cst_7 = arith.constant dense<0.000000e+00> : vector<8xf32>
    %11 = vector.multi_reduction <add>, %10, %cst_7 [1] : vector<8x32xf32> to vector<8xf32>
    %12 = vector.shape_cast %11 : vector<8xf32> to vector<8x1xf32>
    %cst_8 = arith.constant 3.200000e+01 : f32
    %13 = vector.broadcast %cst_8 : f32 to vector<8x1xf32>
    %14 = arith.divf %12, %13 : vector<8x1xf32>
    %15 = vector.broadcast %7 : vector<8x1xf32> to vector<8x32xf32>
    %16 = arith.subf %1, %15 : vector<8x32xf32>
    %cst_9 = arith.constant 9.99999974E-6 : f32
    %17 = vector.broadcast %cst_9 : f32 to vector<8x1xf32>
    %18 = arith.addf %14, %17 : vector<8x1xf32>
    %19 = math.rsqrt %18 : vector<8x1xf32>
    %20 = vector.broadcast %19 : vector<8x1xf32> to vector<8x32xf32>
    %21 = arith.mulf %16, %20 : vector<8x32xf32>
    %22 = vector.broadcast %2 : vector<1x32xf32> to vector<8x32xf32>
    %23 = arith.mulf %21, %22 : vector<8x32xf32>
    %24 = vector.broadcast %3 : vector<1x32xf32> to vector<8x32xf32>
    %25 = arith.addf %23, %24 : vector<8x32xf32>
    %26 = arith.truncf %25 : vector<8x32xf32> to vector<8x32xbf16>
    %c0_10 = arith.constant 0 : index
    %c0_11 = arith.constant 0 : index
    %27 = vector.load %arg5[%c0_10, %c0_11] : memref<32x32xbf16, #tpu.memory_space<vmem>>, vector<32x32xbf16>
    %cst_12 = arith.constant dense<0.000000e+00> : vector<8x32xf32>
    %28 = tpu.matmul %26, %27, %cst_12 {dimension_numbers = #tpu.dot_dimension_numbers<[1], [0], [0], [1], [0, 0, 1, 1], [], []>} : vector<8x32xbf16>, vector<32x32xbf16>, vector<8x32xf32> -> vector<8x32xf32>
    %c0_13 = arith.constant 0 : index
    %c0_14 = arith.constant 0 : index
    %29 = vector.load %arg6[%c0_13, %c0_14] : memref<1x32xf32, #tpu.memory_space<vmem>>, vector<1x32xf32>
    %30 = vector.broadcast %29 : vector<1x32xf32> to vector<8x32xf32>
    %31 = arith.addf %28, %30 : vector<8x32xf32>
    %32 = vector.extract_strided_slice %31 {offsets = [0, 0], sizes = [8, 8], strides = [1, 1]} : vector<8x32xf32> to vector<8x8xf32>
    %33 = arith.truncf %32 : vector<8x8xf32> to vector<8x8xbf16>
    %c0_15 = arith.constant 0 : index
    %c0_16 = arith.constant 0 : index
    %c0_17 = arith.constant 0 : index
    %34 = vector.load %arg7[%c0_15, %c0_16, %c0_17] : memref<4x8x8xbf16, #tpu.memory_space<vmem>>, vector<1x8x8xbf16>
    %35 = vector.shape_cast %34 : vector<1x8x8xbf16> to vector<8x8xbf16>
    %36 = vector.shape_cast %33 : vector<8x8xbf16> to vector<1x8x8xbf16>
    tpu.vector_store %arg7[%c0_15, %c0_16, %c0_17], %36 {strides = array<i32>} : memref<4x8x8xbf16, #tpu.memory_space<vmem>>, vector<1x8x8xbf16>,
    %37 = vector.extract_strided_slice %31 {offsets = [0, 8], sizes = [8, 8], strides = [1, 1]} : vector<8x32xf32> to vector<8x8xf32>
    %38 = arith.truncf %37 : vector<8x8xf32> to vector<8x8xbf16>
    %c1 = arith.constant 1 : index
    %c0_18 = arith.constant 0 : index
    %c0_19 = arith.constant 0 : index
    %39 = vector.load %arg7[%c1, %c0_18, %c0_19] : memref<4x8x8xbf16, #tpu.memory_space<vmem>>, vector<1x8x8xbf16>
    %40 = vector.shape_cast %39 : vector<1x8x8xbf16> to vector<8x8xbf16>
    %41 = vector.shape_cast %38 : vector<8x8xbf16> to vector<1x8x8xbf16>
    tpu.vector_store %arg7[%c1, %c0_18, %c0_19], %41 {strides = array<i32>} : memref<4x8x8xbf16, #tpu.memory_space<vmem>>, vector<1x8x8xbf16>,
    %42 = vector.extract_strided_slice %31 {offsets = [0, 16], sizes = [8, 8], strides = [1, 1]} : vector<8x32xf32> to vector<8x8xf32>
    %43 = arith.truncf %42 : vector<8x8xf32> to vector<8x8xbf16>
    %c2 = arith.constant 2 : index
    %c0_20 = arith.constant 0 : index
    %c0_21 = arith.constant 0 : index
    %44 = vector.load %arg7[%c2, %c0_20, %c0_21] : memref<4x8x8xbf16, #tpu.memory_space<vmem>>, vector<1x8x8xbf16>
    %45 = vector.shape_cast %44 : vector<1x8x8xbf16> to vector<8x8xbf16>
    %46 = vector.shape_cast %43 : vector<8x8xbf16> to vector<1x8x8xbf16>
    tpu.vector_store %arg7[%c2, %c0_20, %c0_21], %46 {strides = array<i32>} : memref<4x8x8xbf16, #tpu.memory_space<vmem>>, vector<1x8x8xbf16>,
    %47 = vector.extract_strided_slice %31 {offsets = [0, 24], sizes = [8, 8], strides = [1, 1]} : vector<8x32xf32> to vector<8x8xf32>
    %48 = arith.truncf %47 : vector<8x8xf32> to vector<8x8xbf16>
    %c3 = arith.constant 3 : index
    %c0_22 = arith.constant 0 : index
    %c0_23 = arith.constant 0 : index
    %49 = vector.load %arg7[%c3, %c0_22, %c0_23] : memref<4x8x8xbf16, #tpu.memory_space<vmem>>, vector<1x8x8xbf16>
    %50 = vector.shape_cast %49 : vector<1x8x8xbf16> to vector<8x8xbf16>
    %51 = vector.shape_cast %48 : vector<8x8xbf16> to vector<1x8x8xbf16>
    tpu.vector_store %arg7[%c3, %c0_22, %c0_23], %51 {strides = array<i32>} : memref<4x8x8xbf16, #tpu.memory_space<vmem>>, vector<1x8x8xbf16>,
    return
  }
  func.func @transform_0(%arg0: i32, %arg1: i32) -> (i32, i32, i32) {
    %c0_i32 = arith.constant 0 : i32
    %c0_i32_0 = arith.constant 0 : i32
    return %arg0, %arg1, %c0_i32 : i32, i32, i32
  }
  func.func @transform_1(%arg0: i32, %arg1: i32) -> (i32, i32) {
    %c0_i32 = arith.constant 0 : i32
    %c0_i32_0 = arith.constant 0 : i32
    %c0_i32_1 = arith.constant 0 : i32
    return %c0_i32, %c0_i32_0 : i32, i32
  }
  func.func @transform_2(%arg0: i32, %arg1: i32) -> (i32, i32) {
    %c0_i32 = arith.constant 0 : i32
    %c0_i32_0 = arith.constant 0 : i32
    %c0_i32_1 = arith.constant 0 : i32
    return %c0_i32, %c0_i32_0 : i32, i32
  }
  func.func @transform_3(%arg0: i32, %arg1: i32) -> (i32, i32) {
    %c0_i32 = arith.constant 0 : i32
    %c0_i32_0 = arith.constant 0 : i32
    %c0_i32_1 = arith.constant 0 : i32
    return %c0_i32, %c0_i32_0 : i32, i32
  }
  func.func @transform_4(%arg0: i32, %arg1: i32) -> (i32, i32) {
    %c0_i32 = arith.constant 0 : i32
    %c0_i32_0 = arith.constant 0 : i32
    %c0_i32_1 = arith.constant 0 : i32
    return %c0_i32, %c0_i32_0 : i32, i32
  }
  func.func @transform_5(%arg0: i32, %arg1: i32) -> (i32, i32, i32) {
    %c0_i32 = arith.constant 0 : i32
    %c0_i32_0 = arith.constant 0 : i32
    return %arg0, %arg1, %c0_i32 : i32, i32, i32
  }
}

module attributes {stable_mosaic.version = 11 : i64} {
  func.func @flash_attention_kernel(%arg0: i32, %arg1: i32, %arg2: i32, %arg3: memref<1x8x8xbf16, #tpu.memory_space<vmem>>, %arg4: memref<1x16x8xbf16, #tpu.memory_space<vmem>>, %arg5: memref<1x16x8xbf16, #tpu.memory_space<vmem>>, %arg6: memref<1x8x8xbf16, #tpu.memory_space<vmem>>, %arg7: memref<8x1xf32, #tpu.memory_space<vmem>>, %arg8: memref<8x1xf32, #tpu.memory_space<vmem>>, %arg9: memref<8x8xf32, #tpu.memory_space<vmem>>) attributes {dimension_semantics = [#tpu.dimension_semantics<parallel>, #tpu.dimension_semantics<parallel>, #tpu.dimension_semantics<arbitrary>], iteration_bounds = array<i64: 8, 1, 1>, scalar_prefetch = 0 : i64, scratch_operands = 3 : i64, tpu.core_type = #tpu.core_type<tc>, window_params = [{transform_indices = @transform_0, window_bounds = array<i64: 1, 8, 8>}, {transform_indices = @transform_1, window_bounds = array<i64: 1, 16, 8>}, {transform_indices = @transform_2, window_bounds = array<i64: 1, 16, 8>}, {transform_indices = @transform_3, window_bounds = array<i64: 1, 8, 8>}]} {
    %c0_i32 = arith.constant 0 : i32
    %0 = arith.cmpi eq, %arg2, %c0_i32 : i32
    %1 = arith.extui %0 : i1 to i32
    %c0_i32_0 = arith.constant 0 : i32
    %2 = arith.cmpi ne, %1, %c0_i32_0 : i32
    scf.if %2 {
      %cst_26 = arith.constant -1.000000e+30 : f32
      %36 = vector.broadcast %cst_26 : f32 to vector<8x1xf32>
      %c0_27 = arith.constant 0 : index
      %c0_28 = arith.constant 0 : index
      %37 = vector.load %arg7[%c0_27, %c0_28] : memref<8x1xf32, #tpu.memory_space<vmem>>, vector<8x1xf32>
      tpu.vector_store %arg7[%c0_27, %c0_28], %36 {strides = array<i32>} : memref<8x1xf32, #tpu.memory_space<vmem>>, vector<8x1xf32>,
      %cst_29 = arith.constant 0.000000e+00 : f32
      %38 = vector.broadcast %cst_29 : f32 to vector<8x1xf32>
      %c0_30 = arith.constant 0 : index
      %c0_31 = arith.constant 0 : index
      %39 = vector.load %arg8[%c0_30, %c0_31] : memref<8x1xf32, #tpu.memory_space<vmem>>, vector<8x1xf32>
      tpu.vector_store %arg8[%c0_30, %c0_31], %38 {strides = array<i32>} : memref<8x1xf32, #tpu.memory_space<vmem>>, vector<8x1xf32>,
      %cst_32 = arith.constant 0.000000e+00 : f32
      %40 = vector.broadcast %cst_32 : f32 to vector<8x8xf32>
      %c0_33 = arith.constant 0 : index
      %c0_34 = arith.constant 0 : index
      %41 = vector.load %arg9[%c0_33, %c0_34] : memref<8x8xf32, #tpu.memory_space<vmem>>, vector<8x8xf32>
      tpu.vector_store %arg9[%c0_33, %c0_34], %40 {strides = array<i32>} : memref<8x8xf32, #tpu.memory_space<vmem>>, vector<8x8xf32>,
    } else {
    }
    %c0 = arith.constant 0 : index
    %c0_1 = arith.constant 0 : index
    %c0_2 = arith.constant 0 : index
    %3 = vector.load %arg3[%c0, %c0_1, %c0_2] : memref<1x8x8xbf16, #tpu.memory_space<vmem>>, vector<1x8x8xbf16>
    %4 = vector.shape_cast %3 : vector<1x8x8xbf16> to vector<8x8xbf16>
    %c0_3 = arith.constant 0 : index
    %c0_4 = arith.constant 0 : index
    %c0_5 = arith.constant 0 : index
    %5 = vector.load %arg4[%c0_3, %c0_4, %c0_5] : memref<1x16x8xbf16, #tpu.memory_space<vmem>>, vector<1x16x8xbf16>
    %6 = vector.shape_cast %5 : vector<1x16x8xbf16> to vector<16x8xbf16>
    %c0_6 = arith.constant 0 : index
    %c0_7 = arith.constant 0 : index
    %c0_8 = arith.constant 0 : index
    %7 = vector.load %arg5[%c0_6, %c0_7, %c0_8] : memref<1x16x8xbf16, #tpu.memory_space<vmem>>, vector<1x16x8xbf16>
    %8 = vector.shape_cast %7 : vector<1x16x8xbf16> to vector<16x8xbf16>
    %cst = arith.constant dense<0.000000e+00> : vector<8x16xf32>
    %9 = tpu.matmul %4, %6, %cst {dimension_numbers = #tpu.dot_dimension_numbers<[1], [1], [0], [0], [0, 0, 1, 0], [], []>} : vector<8x8xbf16>, vector<16x8xbf16>, vector<8x16xf32> -> vector<8x16xf32>
    %c0_9 = arith.constant 0 : index
    %c0_10 = arith.constant 0 : index
    %10 = vector.load %arg7[%c0_9, %c0_10] : memref<8x1xf32, #tpu.memory_space<vmem>>, vector<8x1xf32>
    %cst_11 = arith.constant dense<0xFF800000> : vector<8xf32>
    %11 = vector.multi_reduction <maximumf>, %9, %cst_11 [1] : vector<8x16xf32> to vector<8xf32>
    %12 = vector.shape_cast %11 : vector<8xf32> to vector<8x1xf32>
    %13 = arith.maximumf %10, %12 : vector<8x1xf32>
    %14 = arith.subf %10, %13 : vector<8x1xf32>
    %15 = math.exp %14 : vector<8x1xf32>
    %16 = vector.broadcast %13 : vector<8x1xf32> to vector<8x16xf32>
    %17 = arith.subf %9, %16 : vector<8x16xf32>
    %18 = math.exp %17 : vector<8x16xf32>
    %c0_12 = arith.constant 0 : index
    %c0_13 = arith.constant 0 : index
    %19 = vector.load %arg8[%c0_12, %c0_13] : memref<8x1xf32, #tpu.memory_space<vmem>>, vector<8x1xf32>
    %20 = arith.mulf %15, %19 : vector<8x1xf32>
    %cst_14 = arith.constant dense<0.000000e+00> : vector<8xf32>
    %21 = vector.multi_reduction <add>, %18, %cst_14 [1] : vector<8x16xf32> to vector<8xf32>
    %22 = vector.shape_cast %21 : vector<8xf32> to vector<8x1xf32>
    %23 = arith.addf %20, %22 : vector<8x1xf32>
    %c0_15 = arith.constant 0 : index
    %c0_16 = arith.constant 0 : index
    %24 = vector.load %arg8[%c0_15, %c0_16] : memref<8x1xf32, #tpu.memory_space<vmem>>, vector<8x1xf32>
    tpu.vector_store %arg8[%c0_15, %c0_16], %23 {strides = array<i32>} : memref<8x1xf32, #tpu.memory_space<vmem>>, vector<8x1xf32>,
    %c0_17 = arith.constant 0 : index
    %c0_18 = arith.constant 0 : index
    %25 = vector.load %arg9[%c0_17, %c0_18] : memref<8x8xf32, #tpu.memory_space<vmem>>, vector<8x8xf32>
    %26 = vector.broadcast %15 : vector<8x1xf32> to vector<8x8xf32>
    %27 = arith.mulf %26, %25 : vector<8x8xf32>
    %28 = arith.truncf %18 : vector<8x16xf32> to vector<8x16xbf16>
    %cst_19 = arith.constant dense<0.000000e+00> : vector<8x8xf32>
    %29 = tpu.matmul %28, %8, %cst_19 {dimension_numbers = #tpu.dot_dimension_numbers<[1], [0], [0], [1], [0, 0, 1, 1], [], []>} : vector<8x16xbf16>, vector<16x8xbf16>, vector<8x8xf32> -> vector<8x8xf32>
    %30 = arith.addf %27, %29 : vector<8x8xf32>
    %c0_20 = arith.constant 0 : index
    %c0_21 = arith.constant 0 : index
    %31 = vector.load %arg9[%c0_20, %c0_21] : memref<8x8xf32, #tpu.memory_space<vmem>>, vector<8x8xf32>
    tpu.vector_store %arg9[%c0_20, %c0_21], %30 {strides = array<i32>} : memref<8x8xf32, #tpu.memory_space<vmem>>, vector<8x8xf32>,
    %c0_22 = arith.constant 0 : index
    %c0_23 = arith.constant 0 : index
    %32 = vector.load %arg7[%c0_22, %c0_23] : memref<8x1xf32, #tpu.memory_space<vmem>>, vector<8x1xf32>
    tpu.vector_store %arg7[%c0_22, %c0_23], %13 {strides = array<i32>} : memref<8x1xf32, #tpu.memory_space<vmem>>, vector<8x1xf32>,
    %c0_i32_24 = arith.constant 0 : i32
    %33 = arith.cmpi eq, %arg2, %c0_i32_24 : i32
    %34 = arith.extui %33 : i1 to i32
    %c0_i32_25 = arith.constant 0 : i32
    %35 = arith.cmpi ne, %34, %c0_i32_25 : i32
    scf.if %35 {
      %c0_26 = arith.constant 0 : index
      %c0_27 = arith.constant 0 : index
      %36 = vector.load %arg9[%c0_26, %c0_27] : memref<8x8xf32, #tpu.memory_space<vmem>>, vector<8x8xf32>
      %c0_28 = arith.constant 0 : index
      %c0_29 = arith.constant 0 : index
      %37 = vector.load %arg8[%c0_28, %c0_29] : memref<8x1xf32, #tpu.memory_space<vmem>>, vector<8x1xf32>
      %38 = tpu.reciprocal %37 {approx = true} : vector<8x1xf32> -> vector<8x1xf32>
      %39 = vector.broadcast %38 : vector<8x1xf32> to vector<8x8xf32>
      %40 = arith.mulf %36, %39 : vector<8x8xf32>
      %41 = arith.truncf %40 : vector<8x8xf32> to vector<8x8xbf16>
      %c0_30 = arith.constant 0 : index
      %c0_31 = arith.constant 0 : index
      %c0_32 = arith.constant 0 : index
      %42 = vector.load %arg6[%c0_30, %c0_31, %c0_32] : memref<1x8x8xbf16, #tpu.memory_space<vmem>>, vector<1x8x8xbf16>
      %43 = vector.shape_cast %42 : vector<1x8x8xbf16> to vector<8x8xbf16>
      %44 = vector.shape_cast %41 : vector<8x8xbf16> to vector<1x8x8xbf16>
      tpu.vector_store %arg6[%c0_30, %c0_31, %c0_32], %44 {strides = array<i32>} : memref<1x8x8xbf16, #tpu.memory_space<vmem>>, vector<1x8x8xbf16>,
    } else {
    }
    return
  }
  func.func @transform_0(%arg0: i32, %arg1: i32, %arg2: i32) -> (i32, i32, i32) {
    %c0_i32 = arith.constant 0 : i32
    %c0_i32_0 = arith.constant 0 : i32
    return %arg0, %arg1, %c0_i32 : i32, i32, i32
  }
  func.func @transform_1(%arg0: i32, %arg1: i32, %arg2: i32) -> (i32, i32, i32) {
    %c0_i32 = arith.constant 0 : i32
    %c0_i32_0 = arith.constant 0 : i32
    return %arg0, %arg2, %c0_i32 : i32, i32, i32
  }
  func.func @transform_2(%arg0: i32, %arg1: i32, %arg2: i32) -> (i32, i32, i32) {
    %c0_i32 = arith.constant 0 : i32
    %c0_i32_0 = arith.constant 0 : i32
    return %arg0, %arg2, %c0_i32 : i32, i32, i32
  }
  func.func @transform_3(%arg0: i32, %arg1: i32, %arg2: i32) -> (i32, i32, i32) {
    %c0_i32 = arith.constant 0 : i32
    %c0_i32_0 = arith.constant 0 : i32
    return %arg0, %arg1, %c0_i32 : i32, i32, i32
  }
}

module attributes {stable_mosaic.version = 11 : i64} {
  func.func @proj_heads_kernel(%arg0: i32, %arg1: i32, %arg2: memref<1x16x32xf32, #tpu.memory_space<vmem>>, %arg3: memref<32x64xbf16, #tpu.memory_space<vmem>>, %arg4: memref<1x64xf32, #tpu.memory_space<vmem>>, %arg5: memref<4x16x8xbf16, #tpu.memory_space<vmem>>, %arg6: memref<4x16x8xbf16, #tpu.memory_space<vmem>>) attributes {dimension_semantics = [#tpu.dimension_semantics<parallel>, #tpu.dimension_semantics<parallel>], iteration_bounds = array<i64: 2, 1>, scalar_prefetch = 0 : i64, scratch_operands = 0 : i64, tpu.core_type = #tpu.core_type<tc>, window_params = [{transform_indices = @transform_0, window_bounds = array<i64: 1, 16, 32>}, {pipeline_mode = #tpu.pipeline_mode<synchronous>, transform_indices = @transform_1, window_bounds = array<i64: 32, 64>}, {pipeline_mode = #tpu.pipeline_mode<synchronous>, transform_indices = @transform_2, window_bounds = array<i64: 1, 64>}, {transform_indices = @transform_3, window_bounds = array<i64: 4, 16, 8>}, {transform_indices = @transform_4, window_bounds = array<i64: 4, 16, 8>}]} {
    %c0 = arith.constant 0 : index
    %c0_0 = arith.constant 0 : index
    %c0_1 = arith.constant 0 : index
    %0 = vector.load %arg2[%c0, %c0_0, %c0_1] : memref<1x16x32xf32, #tpu.memory_space<vmem>>, vector<1x16x32xf32>
    %1 = vector.shape_cast %0 : vector<1x16x32xf32> to vector<16x32xf32>
    %2 = arith.truncf %1 : vector<16x32xf32> to vector<16x32xbf16>
    %c0_2 = arith.constant 0 : index
    %c0_3 = arith.constant 0 : index
    %3 = vector.load %arg3[%c0_2, %c0_3] : memref<32x64xbf16, #tpu.memory_space<vmem>>, vector<32x64xbf16>
    %cst = arith.constant dense<0.000000e+00> : vector<16x64xf32>
    %4 = tpu.matmul %2, %3, %cst {dimension_numbers = #tpu.dot_dimension_numbers<[1], [0], [0], [1], [0, 0, 1, 1], [], []>} : vector<16x32xbf16>, vector<32x64xbf16>, vector<16x64xf32> -> vector<16x64xf32>
    %c0_4 = arith.constant 0 : index
    %c0_5 = arith.constant 0 : index
    %5 = vector.load %arg4[%c0_4, %c0_5] : memref<1x64xf32, #tpu.memory_space<vmem>>, vector<1x64xf32>
    %6 = vector.broadcast %5 : vector<1x64xf32> to vector<16x64xf32>
    %7 = arith.addf %4, %6 : vector<16x64xf32>
    %8 = vector.extract_strided_slice %7 {offsets = [0, 0], sizes = [16, 32], strides = [1, 1]} : vector<16x64xf32> to vector<16x32xf32>
    %9 = vector.extract_strided_slice %8 {offsets = [0, 0], sizes = [16, 8], strides = [1, 1]} : vector<16x32xf32> to vector<16x8xf32>
    %10 = arith.truncf %9 : vector<16x8xf32> to vector<16x8xbf16>
    %c0_6 = arith.constant 0 : index
    %c0_7 = arith.constant 0 : index
    %c0_8 = arith.constant 0 : index
    %11 = vector.load %arg5[%c0_6, %c0_7, %c0_8] : memref<4x16x8xbf16, #tpu.memory_space<vmem>>, vector<1x16x8xbf16>
    %12 = vector.shape_cast %11 : vector<1x16x8xbf16> to vector<16x8xbf16>
    %13 = vector.shape_cast %10 : vector<16x8xbf16> to vector<1x16x8xbf16>
    tpu.vector_store %arg5[%c0_6, %c0_7, %c0_8], %13 {strides = array<i32>} : memref<4x16x8xbf16, #tpu.memory_space<vmem>>, vector<1x16x8xbf16>,
    %14 = vector.extract_strided_slice %8 {offsets = [0, 8], sizes = [16, 8], strides = [1, 1]} : vector<16x32xf32> to vector<16x8xf32>
    %15 = arith.truncf %14 : vector<16x8xf32> to vector<16x8xbf16>
    %c1 = arith.constant 1 : index
    %c0_9 = arith.constant 0 : index
    %c0_10 = arith.constant 0 : index
    %16 = vector.load %arg5[%c1, %c0_9, %c0_10] : memref<4x16x8xbf16, #tpu.memory_space<vmem>>, vector<1x16x8xbf16>
    %17 = vector.shape_cast %16 : vector<1x16x8xbf16> to vector<16x8xbf16>
    %18 = vector.shape_cast %15 : vector<16x8xbf16> to vector<1x16x8xbf16>
    tpu.vector_store %arg5[%c1, %c0_9, %c0_10], %18 {strides = array<i32>} : memref<4x16x8xbf16, #tpu.memory_space<vmem>>, vector<1x16x8xbf16>,
    %19 = vector.extract_strided_slice %8 {offsets = [0, 16], sizes = [16, 8], strides = [1, 1]} : vector<16x32xf32> to vector<16x8xf32>
    %20 = arith.truncf %19 : vector<16x8xf32> to vector<16x8xbf16>
    %c2 = arith.constant 2 : index
    %c0_11 = arith.constant 0 : index
    %c0_12 = arith.constant 0 : index
    %21 = vector.load %arg5[%c2, %c0_11, %c0_12] : memref<4x16x8xbf16, #tpu.memory_space<vmem>>, vector<1x16x8xbf16>
    %22 = vector.shape_cast %21 : vector<1x16x8xbf16> to vector<16x8xbf16>
    %23 = vector.shape_cast %20 : vector<16x8xbf16> to vector<1x16x8xbf16>
    tpu.vector_store %arg5[%c2, %c0_11, %c0_12], %23 {strides = array<i32>} : memref<4x16x8xbf16, #tpu.memory_space<vmem>>, vector<1x16x8xbf16>,
    %24 = vector.extract_strided_slice %8 {offsets = [0, 24], sizes = [16, 8], strides = [1, 1]} : vector<16x32xf32> to vector<16x8xf32>
    %25 = arith.truncf %24 : vector<16x8xf32> to vector<16x8xbf16>
    %c3 = arith.constant 3 : index
    %c0_13 = arith.constant 0 : index
    %c0_14 = arith.constant 0 : index
    %26 = vector.load %arg5[%c3, %c0_13, %c0_14] : memref<4x16x8xbf16, #tpu.memory_space<vmem>>, vector<1x16x8xbf16>
    %27 = vector.shape_cast %26 : vector<1x16x8xbf16> to vector<16x8xbf16>
    %28 = vector.shape_cast %25 : vector<16x8xbf16> to vector<1x16x8xbf16>
    tpu.vector_store %arg5[%c3, %c0_13, %c0_14], %28 {strides = array<i32>} : memref<4x16x8xbf16, #tpu.memory_space<vmem>>, vector<1x16x8xbf16>,
    %29 = vector.extract_strided_slice %7 {offsets = [0, 32], sizes = [16, 32], strides = [1, 1]} : vector<16x64xf32> to vector<16x32xf32>
    %30 = vector.extract_strided_slice %29 {offsets = [0, 0], sizes = [16, 8], strides = [1, 1]} : vector<16x32xf32> to vector<16x8xf32>
    %31 = arith.truncf %30 : vector<16x8xf32> to vector<16x8xbf16>
    %c0_15 = arith.constant 0 : index
    %c0_16 = arith.constant 0 : index
    %c0_17 = arith.constant 0 : index
    %32 = vector.load %arg6[%c0_15, %c0_16, %c0_17] : memref<4x16x8xbf16, #tpu.memory_space<vmem>>, vector<1x16x8xbf16>
    %33 = vector.shape_cast %32 : vector<1x16x8xbf16> to vector<16x8xbf16>
    %34 = vector.shape_cast %31 : vector<16x8xbf16> to vector<1x16x8xbf16>
    tpu.vector_store %arg6[%c0_15, %c0_16, %c0_17], %34 {strides = array<i32>} : memref<4x16x8xbf16, #tpu.memory_space<vmem>>, vector<1x16x8xbf16>,
    %35 = vector.extract_strided_slice %29 {offsets = [0, 8], sizes = [16, 8], strides = [1, 1]} : vector<16x32xf32> to vector<16x8xf32>
    %36 = arith.truncf %35 : vector<16x8xf32> to vector<16x8xbf16>
    %c1_18 = arith.constant 1 : index
    %c0_19 = arith.constant 0 : index
    %c0_20 = arith.constant 0 : index
    %37 = vector.load %arg6[%c1_18, %c0_19, %c0_20] : memref<4x16x8xbf16, #tpu.memory_space<vmem>>, vector<1x16x8xbf16>
    %38 = vector.shape_cast %37 : vector<1x16x8xbf16> to vector<16x8xbf16>
    %39 = vector.shape_cast %36 : vector<16x8xbf16> to vector<1x16x8xbf16>
    tpu.vector_store %arg6[%c1_18, %c0_19, %c0_20], %39 {strides = array<i32>} : memref<4x16x8xbf16, #tpu.memory_space<vmem>>, vector<1x16x8xbf16>,
    %40 = vector.extract_strided_slice %29 {offsets = [0, 16], sizes = [16, 8], strides = [1, 1]} : vector<16x32xf32> to vector<16x8xf32>
    %41 = arith.truncf %40 : vector<16x8xf32> to vector<16x8xbf16>
    %c2_21 = arith.constant 2 : index
    %c0_22 = arith.constant 0 : index
    %c0_23 = arith.constant 0 : index
    %42 = vector.load %arg6[%c2_21, %c0_22, %c0_23] : memref<4x16x8xbf16, #tpu.memory_space<vmem>>, vector<1x16x8xbf16>
    %43 = vector.shape_cast %42 : vector<1x16x8xbf16> to vector<16x8xbf16>
    %44 = vector.shape_cast %41 : vector<16x8xbf16> to vector<1x16x8xbf16>
    tpu.vector_store %arg6[%c2_21, %c0_22, %c0_23], %44 {strides = array<i32>} : memref<4x16x8xbf16, #tpu.memory_space<vmem>>, vector<1x16x8xbf16>,
    %45 = vector.extract_strided_slice %29 {offsets = [0, 24], sizes = [16, 8], strides = [1, 1]} : vector<16x32xf32> to vector<16x8xf32>
    %46 = arith.truncf %45 : vector<16x8xf32> to vector<16x8xbf16>
    %c3_24 = arith.constant 3 : index
    %c0_25 = arith.constant 0 : index
    %c0_26 = arith.constant 0 : index
    %47 = vector.load %arg6[%c3_24, %c0_25, %c0_26] : memref<4x16x8xbf16, #tpu.memory_space<vmem>>, vector<1x16x8xbf16>
    %48 = vector.shape_cast %47 : vector<1x16x8xbf16> to vector<16x8xbf16>
    %49 = vector.shape_cast %46 : vector<16x8xbf16> to vector<1x16x8xbf16>
    tpu.vector_store %arg6[%c3_24, %c0_25, %c0_26], %49 {strides = array<i32>} : memref<4x16x8xbf16, #tpu.memory_space<vmem>>, vector<1x16x8xbf16>,
    return
  }
  func.func @transform_0(%arg0: i32, %arg1: i32) -> (i32, i32, i32) {
    %c0_i32 = arith.constant 0 : i32
    %c0_i32_0 = arith.constant 0 : i32
    return %arg0, %arg1, %c0_i32 : i32, i32, i32
  }
  func.func @transform_1(%arg0: i32, %arg1: i32) -> (i32, i32) {
    %c0_i32 = arith.constant 0 : i32
    %c0_i32_0 = arith.constant 0 : i32
    %c0_i32_1 = arith.constant 0 : i32
    return %c0_i32, %c0_i32_0 : i32, i32
  }
  func.func @transform_2(%arg0: i32, %arg1: i32) -> (i32, i32) {
    %c0_i32 = arith.constant 0 : i32
    %c0_i32_0 = arith.constant 0 : i32
    %c0_i32_1 = arith.constant 0 : i32
    return %c0_i32, %c0_i32_0 : i32, i32
  }
  func.func @transform_3(%arg0: i32, %arg1: i32) -> (i32, i32, i32) {
    %c0_i32 = arith.constant 0 : i32
    %c0_i32_0 = arith.constant 0 : i32
    return %arg0, %arg1, %c0_i32 : i32, i32, i32
  }
  func.func @transform_4(%arg0: i32, %arg1: i32) -> (i32, i32, i32) {
    %c0_i32 = arith.constant 0 : i32
    %c0_i32_0 = arith.constant 0 : i32
    return %arg0, %arg1, %c0_i32 : i32, i32, i32
  }
}

module attributes {stable_mosaic.version = 11 : i64} {
  func.func @ln_ffn_residual_kernel(%arg0: i32, %arg1: i32, %arg2: memref<16x32xf32, #tpu.memory_space<vmem>>, %arg3: memref<1x32xf32, #tpu.memory_space<vmem>>, %arg4: memref<1x32xf32, #tpu.memory_space<vmem>>, %arg5: memref<32x128xbf16, #tpu.memory_space<vmem>>, %arg6: memref<1x128xf32, #tpu.memory_space<vmem>>, %arg7: memref<128x32xbf16, #tpu.memory_space<vmem>>, %arg8: memref<1x32xf32, #tpu.memory_space<vmem>>, %arg9: memref<16x32xf32, #tpu.memory_space<vmem>>, %arg10: memref<16x32xbf16, #tpu.memory_space<vmem>>, %arg11: memref<16x32xf32, #tpu.memory_space<vmem>>) attributes {dimension_semantics = [#tpu.dimension_semantics<parallel>, #tpu.dimension_semantics<arbitrary>], iteration_bounds = array<i64: 1, 1>, scalar_prefetch = 0 : i64, scratch_operands = 2 : i64, tpu.core_type = #tpu.core_type<tc>, window_params = [{transform_indices = @transform_0, window_bounds = array<i64: 16, 32>}, {pipeline_mode = #tpu.pipeline_mode<synchronous>, transform_indices = @transform_1, window_bounds = array<i64: 1, 32>}, {pipeline_mode = #tpu.pipeline_mode<synchronous>, transform_indices = @transform_2, window_bounds = array<i64: 1, 32>}, {transform_indices = @transform_3, window_bounds = array<i64: 32, 128>}, {transform_indices = @transform_4, window_bounds = array<i64: 1, 128>}, {transform_indices = @transform_5, window_bounds = array<i64: 128, 32>}, {pipeline_mode = #tpu.pipeline_mode<synchronous>, transform_indices = @transform_6, window_bounds = array<i64: 1, 32>}, {transform_indices = @transform_7, window_bounds = array<i64: 16, 32>}]} {
    %c0_i32 = arith.constant 0 : i32
    %0 = arith.cmpi eq, %arg1, %c0_i32 : i32
    %1 = arith.extui %0 : i1 to i32
    %c0_i32_0 = arith.constant 0 : i32
    %2 = arith.cmpi ne, %1, %c0_i32_0 : i32
    scf.if %2 {
      %c0_16 = arith.constant 0 : index
      %c0_17 = arith.constant 0 : index
      %20 = vector.load %arg2[%c0_16, %c0_17] : memref<16x32xf32, #tpu.memory_space<vmem>>, vector<16x32xf32>
      %c0_18 = arith.constant 0 : index
      %c0_19 = arith.constant 0 : index
      %21 = vector.load %arg3[%c0_18, %c0_19] : memref<1x32xf32, #tpu.memory_space<vmem>>, vector<1x32xf32>
      %c0_20 = arith.constant 0 : index
      %c0_21 = arith.constant 0 : index
      %22 = vector.load %arg4[%c0_20, %c0_21] : memref<1x32xf32, #tpu.memory_space<vmem>>, vector<1x32xf32>
      %cst_22 = arith.constant dense<0.000000e+00> : vector<16xf32>
      %23 = vector.multi_reduction <add>, %20, %cst_22 [1] : vector<16x32xf32> to vector<16xf32>
      %24 = vector.shape_cast %23 : vector<16xf32> to vector<16x1xf32>
      %cst_23 = arith.constant 3.200000e+01 : f32
      %25 = vector.broadcast %cst_23 : f32 to vector<16x1xf32>
      %26 = arith.divf %24, %25 : vector<16x1xf32>
      %27 = vector.broadcast %26 : vector<16x1xf32> to vector<16x32xf32>
      %28 = arith.subf %20, %27 : vector<16x32xf32>
      %29 = arith.mulf %28, %28 : vector<16x32xf32>
      %cst_24 = arith.constant dense<0.000000e+00> : vector<16xf32>
      %30 = vector.multi_reduction <add>, %29, %cst_24 [1] : vector<16x32xf32> to vector<16xf32>
      %31 = vector.shape_cast %30 : vector<16xf32> to vector<16x1xf32>
      %cst_25 = arith.constant 3.200000e+01 : f32
      %32 = vector.broadcast %cst_25 : f32 to vector<16x1xf32>
      %33 = arith.divf %31, %32 : vector<16x1xf32>
      %34 = vector.broadcast %26 : vector<16x1xf32> to vector<16x32xf32>
      %35 = arith.subf %20, %34 : vector<16x32xf32>
      %cst_26 = arith.constant 9.99999974E-6 : f32
      %36 = vector.broadcast %cst_26 : f32 to vector<16x1xf32>
      %37 = arith.addf %33, %36 : vector<16x1xf32>
      %38 = math.rsqrt %37 : vector<16x1xf32>
      %39 = vector.broadcast %38 : vector<16x1xf32> to vector<16x32xf32>
      %40 = arith.mulf %35, %39 : vector<16x32xf32>
      %41 = vector.broadcast %21 : vector<1x32xf32> to vector<16x32xf32>
      %42 = arith.mulf %40, %41 : vector<16x32xf32>
      %43 = vector.broadcast %22 : vector<1x32xf32> to vector<16x32xf32>
      %44 = arith.addf %42, %43 : vector<16x32xf32>
      %45 = arith.truncf %44 : vector<16x32xf32> to vector<16x32xbf16>
      %c0_27 = arith.constant 0 : index
      %c0_28 = arith.constant 0 : index
      %46 = vector.load %arg10[%c0_27, %c0_28] : memref<16x32xbf16, #tpu.memory_space<vmem>>, vector<16x32xbf16>
      tpu.vector_store %arg10[%c0_27, %c0_28], %45 {strides = array<i32>} : memref<16x32xbf16, #tpu.memory_space<vmem>>, vector<16x32xbf16>,
      %c0_29 = arith.constant 0 : index
      %c0_30 = arith.constant 0 : index
      %47 = vector.load %arg8[%c0_29, %c0_30] : memref<1x32xf32, #tpu.memory_space<vmem>>, vector<1x32xf32>
      %48 = vector.broadcast %47 : vector<1x32xf32> to vector<16x32xf32>
      %49 = arith.addf %20, %48 : vector<16x32xf32>
      %c0_31 = arith.constant 0 : index
      %c0_32 = arith.constant 0 : index
      %50 = vector.load %arg11[%c0_31, %c0_32] : memref<16x32xf32, #tpu.memory_space<vmem>>, vector<16x32xf32>
      tpu.vector_store %arg11[%c0_31, %c0_32], %49 {strides = array<i32>} : memref<16x32xf32, #tpu.memory_space<vmem>>, vector<16x32xf32>,
    } else {
    }
    %c0 = arith.constant 0 : index
    %c0_1 = arith.constant 0 : index
    %3 = vector.load %arg10[%c0, %c0_1] : memref<16x32xbf16, #tpu.memory_space<vmem>>, vector<16x32xbf16>
    %c0_2 = arith.constant 0 : index
    %c0_3 = arith.constant 0 : index
    %4 = vector.load %arg5[%c0_2, %c0_3] : memref<32x128xbf16, #tpu.memory_space<vmem>>, vector<32x128xbf16>
    %cst = arith.constant dense<0.000000e+00> : vector<16x128xf32>
    %5 = tpu.matmul %3, %4, %cst {dimension_numbers = #tpu.dot_dimension_numbers<[1], [0], [0], [1], [0, 0, 1, 1], [], []>} : vector<16x32xbf16>, vector<32x128xbf16>, vector<16x128xf32> -> vector<16x128xf32>
    %c0_4 = arith.constant 0 : index
    %c0_5 = arith.constant 0 : index
    %6 = vector.load %arg6[%c0_4, %c0_5] : memref<1x128xf32, #tpu.memory_space<vmem>>, vector<1x128xf32>
    %7 = vector.broadcast %6 : vector<1x128xf32> to vector<16x128xf32>
    %8 = arith.addf %5, %7 : vector<16x128xf32>
    %cst_6 = arith.constant 0.000000e+00 : f32
    %9 = vector.broadcast %cst_6 : f32 to vector<16x128xf32>
    %10 = arith.maximumf %8, %9 : vector<16x128xf32>
    %c0_7 = arith.constant 0 : index
    %c0_8 = arith.constant 0 : index
    %11 = vector.load %arg11[%c0_7, %c0_8] : memref<16x32xf32, #tpu.memory_space<vmem>>, vector<16x32xf32>
    %12 = arith.truncf %10 : vector<16x128xf32> to vector<16x128xbf16>
    %c0_9 = arith.constant 0 : index
    %c0_10 = arith.constant 0 : index
    %13 = vector.load %arg7[%c0_9, %c0_10] : memref<128x32xbf16, #tpu.memory_space<vmem>>, vector<128x32xbf16>
    %cst_11 = arith.constant dense<0.000000e+00> : vector<16x32xf32>
    %14 = tpu.matmul %12, %13, %cst_11 {dimension_numbers = #tpu.dot_dimension_numbers<[1], [0], [0], [1], [0, 0, 1, 1], [], []>} : vector<16x128xbf16>, vector<128x32xbf16>, vector<16x32xf32> -> vector<16x32xf32>
    %15 = arith.addf %11, %14 : vector<16x32xf32>
    %c0_12 = arith.constant 0 : index
    %c0_13 = arith.constant 0 : index
    %16 = vector.load %arg11[%c0_12, %c0_13] : memref<16x32xf32, #tpu.memory_space<vmem>>, vector<16x32xf32>
    tpu.vector_store %arg11[%c0_12, %c0_13], %15 {strides = array<i32>} : memref<16x32xf32, #tpu.memory_space<vmem>>, vector<16x32xf32>,
    %c0_i32_14 = arith.constant 0 : i32
    %17 = arith.cmpi eq, %arg1, %c0_i32_14 : i32
    %18 = arith.extui %17 : i1 to i32
    %c0_i32_15 = arith.constant 0 : i32
    %19 = arith.cmpi ne, %18, %c0_i32_15 : i32
    scf.if %19 {
      %c0_16 = arith.constant 0 : index
      %c0_17 = arith.constant 0 : index
      %20 = vector.load %arg11[%c0_16, %c0_17] : memref<16x32xf32, #tpu.memory_space<vmem>>, vector<16x32xf32>
      %c0_18 = arith.constant 0 : index
      %c0_19 = arith.constant 0 : index
      %21 = vector.load %arg9[%c0_18, %c0_19] : memref<16x32xf32, #tpu.memory_space<vmem>>, vector<16x32xf32>
      tpu.vector_store %arg9[%c0_18, %c0_19], %20 {strides = array<i32>} : memref<16x32xf32, #tpu.memory_space<vmem>>, vector<16x32xf32>,
    } else {
    }
    return
  }
  func.func @transform_0(%arg0: i32, %arg1: i32) -> (i32, i32) {
    %c0_i32 = arith.constant 0 : i32
    %c0_i32_0 = arith.constant 0 : i32
    return %arg0, %c0_i32 : i32, i32
  }
  func.func @transform_1(%arg0: i32, %arg1: i32) -> (i32, i32) {
    %c0_i32 = arith.constant 0 : i32
    %c0_i32_0 = arith.constant 0 : i32
    %c0_i32_1 = arith.constant 0 : i32
    return %c0_i32, %c0_i32_0 : i32, i32
  }
  func.func @transform_2(%arg0: i32, %arg1: i32) -> (i32, i32) {
    %c0_i32 = arith.constant 0 : i32
    %c0_i32_0 = arith.constant 0 : i32
    %c0_i32_1 = arith.constant 0 : i32
    return %c0_i32, %c0_i32_0 : i32, i32
  }
  func.func @transform_3(%arg0: i32, %arg1: i32) -> (i32, i32) {
    %c0_i32 = arith.constant 0 : i32
    %c0_i32_0 = arith.constant 0 : i32
    return %c0_i32, %arg1 : i32, i32
  }
  func.func @transform_4(%arg0: i32, %arg1: i32) -> (i32, i32) {
    %c0_i32 = arith.constant 0 : i32
    %c0_i32_0 = arith.constant 0 : i32
    return %c0_i32, %arg1 : i32, i32
  }
  func.func @transform_5(%arg0: i32, %arg1: i32) -> (i32, i32) {
    %c0_i32 = arith.constant 0 : i32
    %c0_i32_0 = arith.constant 0 : i32
    return %arg1, %c0_i32 : i32, i32
  }
  func.func @transform_6(%arg0: i32, %arg1: i32) -> (i32, i32) {
    %c0_i32 = arith.constant 0 : i32
    %c0_i32_0 = arith.constant 0 : i32
    %c0_i32_1 = arith.constant 0 : i32
    return %c0_i32, %c0_i32_0 : i32, i32
  }
  func.func @transform_7(%arg0: i32, %arg1: i32) -> (i32, i32) {
    %c0_i32 = arith.constant 0 : i32
    %c0_i32_0 = arith.constant 0 : i32
    return %arg0, %c0_i32 : i32, i32
  }
}

</mosaic_0001>

<bundles_post_ra>
// kernel: decoder_layer_forward.9
= control target key start
LH: loop header
LB: loop body
LE: loop exit
PB: predicated region body
PF: predicated region fallthrough
CT: control target
= control target key end

     0   :  { %s654_s12 = smov 0   ;;  %s656_s13 = smov 0   ;;  %s710_s0 = inlined_call_operand.vmem [shape: bf16[8,8,8], index: 0, kind: input, shape index: {}]   ;;  %s711_s1 = inlined_call_operand.vmem [shape: bf16[8,8,8], index: 1, kind: input, shape index: {}]   ;;  %s712_s2 = inlined_call_operand.vmem [shape: bf16[8,8,8], index: 2, kind: input, shape index: {}]   ;;  %s713_s3 = inlined_call_operand.vmem [shape: bf16[8,8,8], index: 3, kind: output, shape index: {}]  }
   0x1   :  { %s658_s14 = smov 0  }
   0x2 LB: > { %s32_s15 = sadd.s32 1, %s624_s13  ;;  %p545_p0 = scmp.ge.s32.totalorder %s628_s14, 1  ;;  %s628_s14 = sphi %s658_s14, %s13_s14   ;;  %s624_s13 = sphi %s656_s13, %s715_s13   ;;  %s620_s12 = sphi %s654_s12, %s714_s12  }
   0x3   : > { %p34_p1 = scmp.ge.s32.totalorder %s32_s15, 8  ;;  %p190_p2 = scmp.lt.s32.totalorder %s628_s14, 9 }
   0x5   : > { %s717_s15 = smov (%p34_p1, %s32_s15), 0  ;;  %p191_p3 = pnand %p545_p0, %p190_p2 }
   0x6   : > { %p232_p4 = scmp.lt.s32.totalorder (!%p191_p3), %s620_s12, 7 }
   0x7   : > { %194 = sbr.rel (%p191_p3) target bundleno = 793 (0x319), region = 32 }
   0xc   : > { %vm268_vm0 = vcmask 64512   ;;  %v630_v0 = vmov 0.0   ;;  %vm631_vm1 = vmmov 0   ;;  %s719_s12 = smov (!%p232_p4, %s620_s12), 7  ;;  %vm265_vm2 = vcmask 7168  }
   0xd   : > { %558 = vmatprep.subr.bf16.mxu0 %v630_v0  ;;  %269 = vst.msk [vmem:[#allocation4] sm:$0xff] %vm268_vm0, %v630_v0  ;;  %560 = vmatprep.mubr.msk.bf16.mxu0 %vm631_vm1, %v630_v0  ;;  %s673_s16 = sshll.u32 %s719_s12, 2  ;;  %v632_v4 = vmov -1e+30   ;;  %v327_v5 = vlaneseq  ;;  %v633_v14 = vmov 0   ;;  %vm372_vm4 = vcmask 1043456  }
   0xe   : > { %564 = vmatprep.subr.bf16.mxu1 %v630_v0  ;;  %566 = vmatprep.mubr.msk.bf16.mxu1 %vm631_vm1, %v630_v0  ;;  %s245_s19 = scalar_lea.vmem %s711_s1, %s673_s16  ;;  %s238_s22 = scalar_lea.vmem %s710_s0, %s673_s16  ;;  %266 = vst.msk [vmem:[#allocation2] sm:$0xff] %vm265_vm2, %v632_v4  ;;  %267 = vst.msk [vmem:[#allocation3] sm:$0xff] %vm265_vm2, %v630_v0  ;;  %vm432_vm5 = vcmask 60416  }
   0xf   : > { %v278_v1 = vld [vmem:[%s245_s19] sm:$0xf]  ;;  %v328_v6 = vshrl.u32 %v327_v5, 7  ;;  %v332_v7 = vand.u32 127, %v327_v5  ;;  %598 = vset.pattern.permute.xlu0 %v633_v14  ;;  %599 = vset.pattern.permute.xlu1 %v633_v14  ;;  %s252_s25 = scalar_lea.vmem %s712_s2, %s673_s16  ;;  %s259_s28 = scalar_lea.vmem %s713_s3, %s673_s16 }
  0x10   : > { %v285_v2 = vsel %vm268_vm0, %v278_v1, 0  ;;  %v277_v3 = vld [vmem:[%s238_s22] sm:$0xf] }
  0x11   : > { %559 = vmatpush3.bf16.xpose.msra.mxu0 %v285_v2  ;;  %vm335_vm3 = vcmp.gt.s32.totalorder %v332_v7, %v328_v6  ;;  %v279_v19 = vld [vmem:[%s252_s25] sm:$0xf] }
  0x12   : > { %v374_v20 = vsel %vm372_vm4, %v279_v19, 0 }
  0x13   : > { %565 = vmatpush3.bf16.msra.mxu1 %v374_v20 }
  0x14   : > { %v361_v35 = vld [vmem:[#allocation4] sm:$0xff] }
  0x15   : > { %v337_v15 = vld [vmem:[#allocation2] sm:$0xff]  ;;  %v353_v29 = vld [vmem:[#allocation3] sm:$0xff] }
  0x18   : > { %561 = vmatmul.mubr.msk.bf16.vlgmr.msra.gmra.mxu0 %vm268_vm0, %v277_v3 }
  0xd8   : > { %v321_v8 = vpop.f32.mrf.mxu0 }
  0xd9   : > { %v336_v9 = vsel %vm335_vm3, -1e+30, %v321_v8 }
  0xda   : > { %v562_v10 = vpop.f32.mrf.mxu0  ;;  %v338_v11 = vsel %vm268_vm0, %v336_v9, -inf }
  0xdb   : > { %339 = vmax.xlane.f32.xlu0 %v338_v11 }
  0xdc   : > { %v324_v12 = vpop.f32.mrf.mxu0 }
  0xde   : > { %v563_v13 = vpop.f32.mrf.mxu0 }
 0x164   : > { %v340_v16 = vpop.xlane.xlu0 %339 }
 0x165   : > { %v341_v17 = vmax.f32 %v337_v15, %v340_v16 }
 0x167   : > { %v342_v18 = vsub.f32 %v337_v15, %v341_v17  ;;  %418 = vst.msk [vmem:[#allocation2] sm:$0xff] %vm265_vm2, %v341_v17  ;;  %347 = vperm.xlu0 %598, %v341_v17  }
 0x169   : > { %v343_v25 = vmul.f32 1.442695, %v342_v18 }
 0x1e2   : > { %v348_v21 = vpop.permute.xlu0 %347 }
 0x1e3   : > { %v350_v22 = vsub.f32 %v336_v9, %v348_v21 }
 0x1e5   : > { %v351_v23 = vmul.f32 1.442695, %v350_v22 }
 0x1e7   : > { %600 = vpow2.f32 %v351_v23 }
 0x1e8   : > { %602 = vpow2.f32 %v343_v25 }
 0x1f4   : > { %v601_v24 = vpop.eup %600 }
 0x1f5   : > { %v355_v26 = vsel %vm268_vm0, %v601_v24, 0.0  ;;  %v368_v27 = vpack.c.bf16 %v601_v24, %v601_v24  ;;  %v603_v28 = vpop.eup %602 }
 0x1f6   : > { %356 = vadd.xlane.f32.xlu1 %v355_v26  ;;  %v354_v30 = vmul.f32 %v603_v28, %v353_v29 }
 0x1f7   : > { %567 = vmatmul.mubr.msk.bf16.vlgmr.msra.gmra.mxu1 %vm268_vm0, %v368_v27 }
 0x207   : > { %364 = vperm.xlu1 %599, %v603_v28  }
 0x27f   : > { %v357_v31 = vpop.xlane.xlu1 %356 }
 0x280   : > { %v358_v32 = vadd.f32 %v357_v31, %v354_v30 }
 0x282   : > { %360 = vst.msk [vmem:[#allocation3] sm:$0xff] %vm265_vm2, %v358_v32 }
 0x283   : > { %v365_v36 = vpop.permute.xlu1 %364 }
 0x284   : > { %v367_v37 = vmul.f32 %v365_v36, %v361_v35 }
 0x289   : > { %v423_v33 = vld [vmem:[#allocation3] sm:$0xff] }
 0x28a   : > { %604 = vrcp.f32 %v423_v33 }
 0x297   : > { %v605_v34 = vpop.eup %604 }
 0x298   : > { %427 = vperm.xlu1 %599, %v605_v34  }
 0x2b7   : > { %v410_v38 = vpop.f32.mrf.mxu1 }
 0x2b8   : > { %v416_v39 = vadd.f32 %v410_v38, %v367_v37 }
 0x2b9   : > { %v568_v40 = vpop.f32.mrf.mxu1 }
 0x2ba   : > { %417 = vst.msk [vmem:[#allocation4] sm:$0xff] %vm268_vm0, %v416_v39 }
 0x2bb   : > { %v413_v41 = vpop.f32.mrf.mxu1 }
 0x2bd   : > { %v569_v42 = vpop.f32.mrf.mxu1 }
 0x2c1   : > { %v422_v43 = vld [vmem:[#allocation4] sm:$0xff] }
 0x313   : > { %v428_v44 = vpop.permute.xlu1 %427 }
 0x314   : > { %v430_v45 = vmul.f32 %v428_v44, %v422_v43 }
 0x316   : > { %v431_v46 = vpack.c.bf16 %v430_v45, %v430_v45 }
 0x318   : > { %433 = vst.msk [vmem:[%s259_s28] sm:$0xf] %vm432_vm5, %v431_v46 }
 0x319 PF: > { %s13_s14 = sadd.s32 1, %s628_s14   ;;  %s714_s12 = smov %s624_s13 }
 0x31a   : > { %p10_p5 = scmp.ge.s32.totalorder %s13_s14, 10   ;;  %s715_s13 = smov %s717_s15 }
 0x31c   :  { %12 = sbr.rel (!%p10_p5) target bundleno = 2 (0x2), region = 80 }

// kernel: decoder_layer_forward.10
= control target key start
LH: loop header
LB: loop body
LE: loop exit
PB: predicated region body
PF: predicated region fallthrough
CT: control target
= control target key end

     0   :  { %s569_s15 = smov 0   ;;  %s571_s16 = smov 0   ;;  %s621_s0 = inlined_call_operand.vmem [shape: bf16[8,8,8], index: 0, kind: input, shape index: {}]   ;;  %s622_s1 = inlined_call_operand.vmem [shape: bf16[32,32], index: 1, kind: input, shape index: {}]   ;;  %s623_s2 = inlined_call_operand.vmem [shape: f32[1,32], index: 2, kind: input, shape index: {}]   ;;  %s624_s3 = inlined_call_operand.vmem [shape: f32[2,8,32], index: 3, kind: input, shape index: {}]   ;;  %s625_s4 = inlined_call_operand.vmem [shape: f32[2,8,32], index: 4, kind: output, shape index: {}]  }
   0x1   :  { %s573_s17 = smov 0  }
   0x2 LB: > { %s26_s18 = sadd.s32 1, %s533_s16  ;;  %p453_p0 = scmp.ge.s32.totalorder %s537_s17, 1  ;;  %s537_s17 = sphi %s573_s17, %s14_s17   ;;  %s533_s16 = sphi %s571_s16, %s627_s16   ;;  %s529_s15 = sphi %s569_s15, %s626_s15  }
   0x3   : > { %p28_p1 = scmp.ge.s32.totalorder %s26_s18, 2  ;;  %p196_p2 = scmp.lt.s32.totalorder %s537_s17, 3 }
   0x5   : > { %s629_s18 = smov (%p28_p1, %s26_s18), 0  ;;  %p197_p3 = pnand %p453_p0, %p196_p2 }
   0x6   : > { %s454_s19 = sshll.u32 (!%p197_p3), %s529_s15, 2  ;;  %s541_s28 = smov (!%p197_p3), 8  }
   0x7   : > { %200 = sbr.rel (%p197_p3) target bundleno = 336 (0x150), region = 36  ;;  %p235_p4 = scmp.lt.s32.totalorder (!%p197_p3), %s454_s19, 7 }
   0x8   : > { %s542_s29 = smov (!%p197_p3), 24   ;;  %s543_s30 = smov (!%p197_p3), 16  }
   0x9   : > { %p243_p5 = scmp.lt.s32.totalorder (!%p197_p3), %s529_s15, 1 }
   0xc   : > { %v513_v0 = vld [vmem:[%s622_s1 + $0x8] sm:$0xff]   ;;  %v539_v1 = vmov 0.0   ;;  %v514_v2 = vld [vmem:[%s622_s1] sm:$0xff]   ;;  %s631_s19 = smov (!%p235_p4, %s454_s19), 7  ;;  %vm540_vm0 = vmmov 0   ;;  %vm280_vm1 = vcmask 64512  }
   0xd   : > { %473 = vmatprep.subr.bf16.mxu0 %v539_v1  ;;  %477 = vmatprep.mubr.msk.bf16.mxu0 %vm540_vm0, %v539_v1  ;;  %s455_s24 = sshll.u32 %s631_s19, 2  ;;  %vm284_vm2 = vcmask 130048   ;;  %vm287_vm3 = vcmask 195584   ;;  %vm306_vm4 = vcmask 261120   ;;  %s633_s15 = smov (!%p243_p5, %s529_s15), 1 }
   0xe   : > { %474 = vmatpush3.bf16.msra.mxu0 %v513_v0  ;;  %s241_s27 = scalar_lea.vmem %s621_s0, %s455_s24  ;;  %s456_s5 = sshll.u32 %s633_s15, 3  ;;  %v467_v15 = vld [vmem:[%s623_s2] ss:$0 sm:$0xff] }
   0xf   : > { %475 = vmatprep.subr.bf16.mxu0 %v539_v1  ;;  %v510_v3 = vld [vmem:[%s241_s27 + $0x4] ss:$0 sps:$4 sm:$0xff]   ;;  %v512_v4 = vld [vmem:[%s241_s27 + $0xc] ss:$0 sps:$4 sm:$0xff]   ;;  %v511_v5 = vld [vmem:[%s241_s27 + $0x8] ss:$0 sps:$4 sm:$0xff]   ;;  %s249_s8 = scalar_lea.vmem %s624_s3, %s456_s5  ;;  %s256_s13 = scalar_lea.vmem %s625_s4, %s456_s5 }
  0x10   : > { %268 = vrot.lane.b32.xlu0 %v510_v3, %s541_s28  ;;  %278 = vrot.lane.b32.xlu1 %v512_v4, %s542_s29  ;;  %v258_v7 = vld [vmem:[%s241_s27] sm:$0xf] }
  0x11   : > { %v349_v13 = vld [vmem:[%s249_s8] sm:$0xff] }
  0x12   : > { %476 = vmatpush3.bf16.msra.mxu0 %v514_v2 }
  0x14   : > { %273 = vrot.lane.b32.xlu0 %v511_v5, %s543_s30 }
  0x82   : > { %v269_v6 = vpop.permute.xlu0 %268  ;;  %v279_v8 = vpop.permute.xlu1 %278 }
  0x83   : > { %v283_v9 = vsel %vm280_vm1, %v258_v7, %v269_v6 }
  0x86   : > { %v274_v10 = vpop.permute.xlu0 %273 }
  0x87   : > { %v286_v11 = vsel %vm284_vm2, %v283_v9, %v274_v10 }
  0x88   : > { %v289_v12 = vsel %vm287_vm3, %v286_v11, %v279_v8 }
  0x89   : > { %478 = vmatmul.mubr.msk.bf16.vlgmr.msra.gmra.mxu0 %vm306_vm4, %v289_v12 }
 0x149   : > { %v343_v14 = vpop.f32.mrf.mxu0 }
 0x14a   : > { %v350_v16 = vadd.f32 %v349_v13, %v343_v14 }
 0x14b   : > { %v479_v17 = vpop.f32.mrf.mxu0 }
 0x14c   : > { %v358_v18 = vadd.f32 %v467_v15, %v350_v16 }
 0x14d   : > { %v346_v19 = vpop.f32.mrf.mxu0 }
 0x14e   : > { %359 = vst.msk [vmem:[%s256_s13] sm:$0xff] %vm306_vm4, %v358_v18 }
 0x14f   : > { %v480_v20 = vpop.f32.mrf.mxu0 }
 0x150 PF: > { %s14_s17 = sadd.s32 1, %s537_s17   ;;  %s626_s15 = smov %s533_s16 }
 0x151   : > { %p11_p6 = scmp.ge.s32.totalorder %s14_s17, 4   ;;  %s627_s16 = smov %s629_s18 }
 0x153   :  { %13 = sbr.rel (!%p11_p6) target bundleno = 2 (0x2), region = 72 }

// kernel: decoder_layer_forward.8
= control target key start
LH: loop header
LB: loop body
LE: loop exit
PB: predicated region body
PF: predicated region fallthrough
CT: control target
= control target key end

     0   :  { %s836_s24 = smov 0   ;;  %s838_s25 = smov 0   ;;  %s921_s0 = inlined_call_operand.vmem [shape: f32[2,8,32], index: 0, kind: input, shape index: {}]   ;;  %s922_s1 = inlined_call_operand.vmem [shape: f32[1,32], index: 1, kind: input, shape index: {}]   ;;  %s923_s2 = inlined_call_operand.vmem [shape: f32[1,32], index: 2, kind: input, shape index: {}]   ;;  %s924_s3 = inlined_call_operand.vmem [shape: bf16[32,96], index: 3, kind: input, shape index: {}]   ;;  %s925_s4 = inlined_call_operand.vmem [shape: f32[1,96], index: 4, kind: input, shape index: {}]   ;;  %s926_s5 = inlined_call_operand.vmem [shape: bf16[8,8,8], index: 5, kind: output, shape index: {0}]   ;;  %s927_s6 = inlined_call_operand.vmem [shape: bf16[8,8,8], index: 6, kind: output, shape index: {1}]   ;;  %s928_s7 = inlined_call_operand.vmem [shape: bf16[8,8,8], index: 7, kind: output, shape index: {2}]  }
   0x1   :  { %s840_s26 = smov 0  }
   0x2 LB: > { %s30_s27 = sadd.s32 1, %s777_s25  ;;  %p680_p0 = scmp.ge.s32.totalorder %s781_s26, 1  ;;  %s781_s26 = sphi %s840_s26, %s18_s26   ;;  %s777_s25 = sphi %s838_s25, %s930_s25   ;;  %s773_s24 = sphi %s836_s24, %s929_s24  }
   0x3   : > { %p32_p1 = scmp.ge.s32.totalorder %s30_s27, 2  ;;  %p264_p2 = scmp.lt.s32.totalorder %s781_s26, 3 }
   0x5   : > { %s932_s27 = smov (%p32_p1, %s30_s27), 0  ;;  %p265_p3 = pnand %p680_p0, %p264_p2 }
   0x6   : > { %p317_p4 = scmp.lt.s32.totalorder (!%p265_p3), %s773_s24, 1  ;;  %s682_s18 = sshll.u32 (!%p265_p3), %s773_s24, 2 }
   0x7   : > { %268 = sbr.rel (%p265_p3) target bundleno = 672 (0x2a0), region = 40  ;;  %p325_p5 = scmp.lt.s32.totalorder (!%p265_p3), %s682_s18, 7 }
   0x8   : > { %s787_s30 = smov (!%p265_p3), 72   ;;  %s788_s8 = smov (!%p265_p3), 64  }
   0x9   : > { %s790_s10 = smov (!%p265_p3), 56   ;;  %s791_s11 = smov (!%p265_p3), 112  }
   0xa   : > { %s792_s12 = smov (!%p265_p3), 80   ;;  %s793_s13 = smov (!%p265_p3), 48  }
   0xb   : > { %s794_s14 = smov (!%p265_p3), 104   ;;  %s795_s15 = smov (!%p265_p3), 40  }
   0xc   : > { %s318_s28 = scalar_select %p317_p4, %s773_s24, 1  ;;  %vm355_vm0 = vcmask 261120   ;;  %v755_v7 = vld [vmem:[%s924_s3 + $0x8] sm:$0xff]   ;;  %v783_v8 = vmov 0.0   ;;  %vm784_vm1 = vmmov 0   ;;  %v756_v9 = vld [vmem:[%s924_s3] sm:$0xff]  }
   0xd   : > { %710 = vmatprep.subr.bf16.mxu0 %v783_v8  ;;  %714 = vmatprep.mubr.msk.bf16.mxu0 %vm784_vm1, %v783_v8  ;;  %v688_v14 = vld [vmem:[%s922_s1] ss:$0 sm:$0xff]  ;;  %s934_s18 = smov (!%p325_p5, %s682_s18), 7  ;;  %vm452_vm2 = vcmask 60416   ;;  %s785_s24 = smov 120  }
   0xe   : > { %s681_s29 = sshll.u32 %s318_s28, 3  ;;  %711 = vmatpush3.bf16.msra.mxu0 %v755_v7  ;;  %v689_v16 = vld [vmem:[%s923_s2] ss:$0 sm:$0xff]  ;;  %s880_s21 = sshll.u32 %s934_s18, 2 }
   0xf   : > { %s323_s9 = scalar_lea.vmem %s921_s0, %s681_s29  ;;  %712 = vmatprep.subr.bf16.mxu0 %v783_v8  ;;  %v690_v20 = vld [vmem:[%s925_s4] ss:$0 sm:$0xff]  ;;  %s886_s28 = scalar_lea.vmem %s926_s5, %s880_s21 }
  0x10   : > { %v352_v0 = vld [vmem:[%s323_s9] sm:$0xff]  ;;  %s786_s29 = smov 96   ;;  %s789_s9 = smov 88  }
  0x11   : > { %v356_v1 = vsel %vm355_vm0, %v352_v0, 0.0  ;;  %s340_s18 = scalar_lea.vmem %s927_s6, %s880_s21  ;;  %s349_s22 = scalar_lea.vmem %s928_s7, %s880_s21 }
  0x12   : > { %357 = vadd.xlane.f32.xlu0 %v356_v1  ;;  %713 = vmatpush3.bf16.msra.mxu0 %v756_v9 }
  0x9b   : > { %v358_v2 = vpop.xlane.xlu0 %357 }
  0x9c   : > { %v360_v3 = vmul.f32 0.03125, %v358_v2 }
  0x9e   : > { %v361_v4 = vsub.f32 %v352_v0, %v360_v3 }
  0xa0   : > { %v362_v5 = vmul.f32 %v361_v4, %v361_v4 }
  0xa2   : > { %v363_v6 = vsel %vm355_vm0, %v362_v5, 0.0 }
  0xa3   : > { %364 = vadd.xlane.f32.xlu0 %v363_v6 }
 0x12c   : > { %v365_v10 = vpop.xlane.xlu0 %364 }
 0x12d   : > { %v366_v11 = vmul.f32 0.03125, %v365_v10 }
 0x12f   : > { %v367_v12 = vadd.f32 1e-05, %v366_v11 }
 0x131   : > { %757 = vrsqrt.f32 %v367_v12 }
 0x13e   : > { %v758_v13 = vpop.eup %757 }
 0x13f   : > { %v369_v15 = vmul.f32 %v758_v13, %v361_v4 }
 0x141   : > { %v376_v17 = vmul.f32 %v688_v14, %v369_v15 }
 0x143   : > { %v383_v18 = vadd.f32 %v689_v16, %v376_v17 }
 0x145   : > { %v384_v19 = vpack.c.bf16 %v383_v18, %v383_v18 }
 0x147   : > { %715 = vmatmul.mubr.msk.bf16.vlgmr.msra.gmra.mxu0 %vm355_vm0, %v384_v19 }
 0x207   : > { %v445_v21 = vpop.f32.mrf.mxu0 }
 0x208   : > { %v446_v22 = vadd.f32 %v690_v20, %v445_v21 }
 0x209   : > { %v716_v23 = vpop.f32.mrf.mxu0 }
 0x20a   : > { %v451_v24 = vpack.c.bf16 %v446_v22, %v446_v22 }
 0x20b   : > { %v448_v25 = vpop.f32.mrf.mxu0 }
 0x20c   : > { %457 = vrot.lane.b32.xlu0 %v451_v24, %s785_s24  ;;  %472 = vrot.lane.b32.xlu1 %v451_v24, %s786_s29  ;;  %453 = vst.msk [vmem:[%s886_s28] sm:$0xf] %vm452_vm2, %v451_v24 }
 0x20d   : > { %v717_v26 = vpop.f32.mrf.mxu0 }
 0x210   : > { %486 = vrot.lane.b32.xlu0 %v451_v24, %s787_s30  ;;  %491 = vrot.lane.b32.xlu1 %v451_v24, %s788_s8 }
 0x214   : > { %476 = vrot.lane.b32.xlu1 %v451_v24, %s789_s9 }
 0x218   : > { %495 = vrot.lane.b32.xlu1 %v451_v24, %s790_s10 }
 0x21c   : > { %462 = vrot.lane.b32.xlu1 %v451_v24, %s791_s11 }
 0x220   : > { %481 = vrot.lane.b32.xlu1 %v451_v24, %s792_s12 }
 0x224   : > { %500 = vrot.lane.b32.xlu1 %v451_v24, %s793_s13 }
 0x228   : > { %467 = vrot.lane.b32.xlu1 %v451_v24, %s794_s14 }
 0x22c   : > { %505 = vrot.lane.b32.xlu1 %v451_v24, %s795_s15 }
 0x27e   : > { %v458_v27 = vpop.permute.xlu0 %457  ;;  %v473_v28 = vpop.permute.xlu1 %472 }
 0x27f   : > { %695 = vst.msk [vmem:[%s886_s28 + $0x4] sm:$0xf] %vm452_vm2, %v458_v27  ;;  %475 = vst.msk [vmem:[%s340_s18] sm:$0xf] %vm452_vm2, %v473_v28 }
 0x282   : > { %v492_v29 = vpop.permute.xlu1 %491  ;;  %v487_v34 = vpop.permute.xlu0 %486 }
 0x283   : > { %494 = vst.msk [vmem:[%s349_s22] sm:$0xf] %vm452_vm2, %v492_v29  ;;  %700 = vst.msk [vmem:[%s340_s18 + $0xc] sm:$0xf] %vm452_vm2, %v487_v34 }
 0x286   : > { %v477_v30 = vpop.permute.xlu1 %476 }
 0x287   : > { %698 = vst.msk [vmem:[%s340_s18 + $0x4] sm:$0xf] %vm452_vm2, %v477_v30 }
 0x28a   : > { %v496_v31 = vpop.permute.xlu1 %495 }
 0x28b   : > { %701 = vst.msk [vmem:[%s349_s22 + $0x4] sm:$0xf] %vm452_vm2, %v496_v31 }
 0x28e   : > { %v463_v32 = vpop.permute.xlu1 %462 }
 0x28f   : > { %696 = vst.msk [vmem:[%s886_s28 + $0x8] sm:$0xf] %vm452_vm2, %v463_v32 }
 0x292   : > { %v482_v33 = vpop.permute.xlu1 %481 }
 0x293   : > { %699 = vst.msk [vmem:[%s340_s18 + $0x8] sm:$0xf] %vm452_vm2, %v482_v33 }
 0x296   : > { %v501_v35 = vpop.permute.xlu1 %500 }
 0x297   : > { %702 = vst.msk [vmem:[%s349_s22 + $0x8] sm:$0xf] %vm452_vm2, %v501_v35 }
 0x29a   : > { %v468_v36 = vpop.permute.xlu1 %467 }
 0x29b   : > { %697 = vst.msk [vmem:[%s886_s28 + $0xc] sm:$0xf] %vm452_vm2, %v468_v36 }
 0x29e   : > { %v506_v37 = vpop.permute.xlu1 %505 }
 0x29f   : > { %703 = vst.msk [vmem:[%s349_s22 + $0xc] sm:$0xf] %vm452_vm2, %v506_v37 }
 0x2a0 PF: > { %s18_s26 = sadd.s32 1, %s781_s26   ;;  %s929_s24 = smov %s777_s25 }
 0x2a1   : > { %p15_p6 = scmp.ge.s32.totalorder %s18_s26, 4   ;;  %s930_s25 = smov %s932_s27 }
 0x2a3   :  { %17 = sbr.rel (!%p15_p6) target bundleno = 2 (0x2), region = 103 }

// kernel: decoder_layer_forward.11
= control target key start
LH: loop header
LB: loop body
LE: loop exit
PB: predicated region body
PF: predicated region fallthrough
CT: control target
= control target key end

     0   :  { %s577_s18 = smov 0   ;;  %s579_s19 = smov 0   ;;  %s637_s0 = inlined_call_operand.vmem [shape: f32[2,8,32], index: 0, kind: input, shape index: {}]   ;;  %s638_s1 = inlined_call_operand.vmem [shape: f32[1,32], index: 1, kind: input, shape index: {}]   ;;  %s639_s2 = inlined_call_operand.vmem [shape: f32[1,32], index: 2, kind: input, shape index: {}]   ;;  %s640_s3 = inlined_call_operand.vmem [shape: bf16[32,32], index: 3, kind: input, shape index: {}]   ;;  %s641_s4 = inlined_call_operand.vmem [shape: f32[1,32], index: 4, kind: input, shape index: {}]   ;;  %s642_s5 = inlined_call_operand.vmem [shape: bf16[8,8,8], index: 5, kind: output, shape index: {}]  }
   0x1   :  { %s581_s20 = smov 0  }
   0x2 LB: > { %s27_s21 = sadd.s32 1, %s536_s19  ;;  %p457_p0 = scmp.ge.s32.totalorder %s540_s20, 1  ;;  %s540_s20 = sphi %s581_s20, %s15_s20   ;;  %s536_s19 = sphi %s579_s19, %s644_s19   ;;  %s532_s18 = sphi %s577_s18, %s643_s18  }
   0x3   : > { %p29_p1 = scmp.ge.s32.totalorder %s27_s21, 2  ;;  %p205_p2 = scmp.lt.s32.totalorder %s540_s20, 3 }
   0x5   : > { %s646_s21 = smov (%p29_p1, %s27_s21), 0  ;;  %p206_p3 = pnand %p457_p0, %p205_p2 }
   0x6   : > { %p238_p4 = scmp.lt.s32.totalorder (!%p206_p3), %s532_s18, 1  ;;  %s459_s10 = sshll.u32 (!%p206_p3), %s532_s18, 2 }
   0x7   : > { %209 = sbr.rel (%p206_p3) target bundleno = 644 (0x284), region = 40  ;;  %p246_p5 = scmp.lt.s32.totalorder (!%p206_p3), %s459_s10, 7 }
   0x8   : > { %s544_s17 = smov (!%p206_p3), 104  }
   0xc   : > { %s239_s22 = scalar_select %p238_p4, %s532_s18, 1  ;;  %vm258_vm0 = vcmask 261120   ;;  %v514_v7 = vld [vmem:[%s640_s3 + $0x8] sm:$0xff]   ;;  %v542_v8 = vmov 0.0   ;;  %vm543_vm1 = vmmov 0   ;;  %v515_v9 = vld [vmem:[%s640_s3] sm:$0xff]  }
   0xd   : > { %477 = vmatprep.subr.bf16.mxu0 %v542_v8  ;;  %481 = vmatprep.mubr.msk.bf16.mxu0 %vm543_vm1, %v542_v8  ;;  %v461_v14 = vld [vmem:[%s638_s1] ss:$0 sm:$0xff]  ;;  %s648_s10 = smov (!%p246_p5, %s459_s10), 7  ;;  %vm355_vm2 = vcmask 60416   ;;  %s545_s18 = smov 120  }
   0xe   : > { %s458_s23 = sshll.u32 %s239_s22, 3  ;;  %478 = vmatpush3.bf16.msra.mxu0 %v514_v7  ;;  %v462_v16 = vld [vmem:[%s639_s2] ss:$0 sm:$0xff]  ;;  %s460_s13 = sshll.u32 %s648_s10, 2 }
   0xf   : > { %s244_s26 = scalar_lea.vmem %s637_s0, %s458_s23  ;;  %479 = vmatprep.subr.bf16.mxu0 %v542_v8  ;;  %v463_v20 = vld [vmem:[%s641_s4] ss:$0 sm:$0xff]  ;;  %s252_s16 = scalar_lea.vmem %s642_s5, %s460_s13 }
  0x10   : > { %v255_v0 = vld [vmem:[%s244_s26] sm:$0xff]  ;;  %s546_s22 = smov 112  }
  0x11   : > { %v259_v1 = vsel %vm258_vm0, %v255_v0, 0.0 }
  0x12   : > { %260 = vadd.xlane.f32.xlu0 %v259_v1  ;;  %480 = vmatpush3.bf16.msra.mxu0 %v515_v9 }
  0x9b   : > { %v261_v2 = vpop.xlane.xlu0 %260 }
  0x9c   : > { %v263_v3 = vmul.f32 0.03125, %v261_v2 }
  0x9e   : > { %v264_v4 = vsub.f32 %v255_v0, %v263_v3 }
  0xa0   : > { %v265_v5 = vmul.f32 %v264_v4, %v264_v4 }
  0xa2   : > { %v266_v6 = vsel %vm258_vm0, %v265_v5, 0.0 }
  0xa3   : > { %267 = vadd.xlane.f32.xlu0 %v266_v6 }
 0x12c   : > { %v268_v10 = vpop.xlane.xlu0 %267 }
 0x12d   : > { %v269_v11 = vmul.f32 0.03125, %v268_v10 }
 0x12f   : > { %v270_v12 = vadd.f32 1e-05, %v269_v11 }
 0x131   : > { %516 = vrsqrt.f32 %v270_v12 }
 0x13e   : > { %v517_v13 = vpop.eup %516 }
 0x13f   : > { %v272_v15 = vmul.f32 %v517_v13, %v264_v4 }
 0x141   : > { %v279_v17 = vmul.f32 %v461_v14, %v272_v15 }
 0x143   : > { %v286_v18 = vadd.f32 %v462_v16, %v279_v17 }
 0x145   : > { %v287_v19 = vpack.c.bf16 %v286_v18, %v286_v18 }
 0x147   : > { %482 = vmatmul.mubr.msk.bf16.vlgmr.msra.gmra.mxu0 %vm258_vm0, %v287_v19 }
 0x207   : > { %v348_v21 = vpop.f32.mrf.mxu0 }
 0x208   : > { %v349_v22 = vadd.f32 %v463_v20, %v348_v21 }
 0x209   : > { %v483_v23 = vpop.f32.mrf.mxu0 }
 0x20a   : > { %v354_v24 = vpack.c.bf16 %v349_v22, %v349_v22 }
 0x20b   : > { %v351_v25 = vpop.f32.mrf.mxu0 }
 0x20c   : > { %370 = vrot.lane.b32.xlu0 %v354_v24, %s544_s17  ;;  %360 = vrot.lane.b32.xlu1 %v354_v24, %s545_s18  ;;  %356 = vst.msk [vmem:[%s252_s16] sm:$0xf] %vm355_vm2, %v354_v24 }
 0x20d   : > { %v484_v26 = vpop.f32.mrf.mxu0 }
 0x210   : > { %365 = vrot.lane.b32.xlu1 %v354_v24, %s546_s22 }
 0x27e   : > { %v361_v27 = vpop.permute.xlu1 %360  ;;  %v371_v29 = vpop.permute.xlu0 %370 }
 0x27f   : > { %468 = vst.msk [vmem:[%s252_s16 + $0x4] sm:$0xf] %vm355_vm2, %v361_v27  ;;  %470 = vst.msk [vmem:[%s252_s16 + $0xc] sm:$0xf] %vm355_vm2, %v371_v29 }
 0x282   : > { %v366_v28 = vpop.permute.xlu1 %365 }
 0x283   : > { %469 = vst.msk [vmem:[%s252_s16 + $0x8] sm:$0xf] %vm355_vm2, %v366_v28 }
 0x284 PF: > { %s15_s20 = sadd.s32 1, %s540_s20   ;;  %s643_s18 = smov %s536_s19 }
 0x285   : > { %p12_p6 = scmp.ge.s32.totalorder %s15_s20, 4   ;;  %s644_s19 = smov %s646_s21 }
 0x287   :  { %14 = sbr.rel (!%p12_p6) target bundleno = 2 (0x2), region = 73 }

// kernel: decoder_layer_forward.13
= control target key start
LH: loop header
LB: loop body
LE: loop exit
PB: predicated region body
PF: predicated region fallthrough
CT: control target
= control target key end

     0   :  { %s677_s12 = smov 0   ;;  %s679_s13 = smov 0   ;;  %s739_s0 = inlined_call_operand.vmem [shape: bf16[8,8,8], index: 0, kind: input, shape index: {}]   ;;  %s740_s1 = inlined_call_operand.vmem [shape: bf16[8,16,8], index: 1, kind: input, shape index: {}]   ;;  %s741_s2 = inlined_call_operand.vmem [shape: bf16[8,16,8], index: 2, kind: input, shape index: {}]   ;;  %s742_s3 = inlined_call_operand.vmem [shape: bf16[8,8,8], index: 3, kind: output, shape index: {}]  }
   0x1   :  { %s681_s14 = smov 0  }
   0x2 LB: > { %s32_s15 = sadd.s32 1, %s647_s13  ;;  %p560_p0 = scmp.ge.s32.totalorder %s651_s14, 1  ;;  %s651_s14 = sphi %s681_s14, %s13_s14   ;;  %s647_s13 = sphi %s679_s13, %s744_s13   ;;  %s643_s12 = sphi %s677_s12, %s743_s12  }
   0x3   : > { %p34_p1 = scmp.ge.s32.totalorder %s32_s15, 8  ;;  %p196_p2 = scmp.lt.s32.totalorder %s651_s14, 9 }
   0x5   : > { %s746_s15 = smov (%p34_p1, %s32_s15), 0  ;;  %p197_p3 = pnand %p560_p0, %p196_p2 }
   0x6   : > { %p242_p4 = scmp.lt.s32.totalorder (!%p197_p3), %s643_s12, 7 }
   0x7   : > { %200 = sbr.rel (%p197_p3) target bundleno = 792 (0x318), region = 32 }
   0xc   : > { %vm284_vm0 = vcmask 64512   ;;  %v653_v0 = vmov 0.0   ;;  %vm654_vm1 = vmmov 0   ;;  %s748_s12 = smov (!%p242_p4, %s643_s12), 7  ;;  %vm281_vm2 = vcmask 7168  }
   0xd   : > { %579 = vmatprep.subr.bf16.mxu0 %v653_v0  ;;  %285 = vst.msk [vmem:[#allocation4] sm:$0xff] %vm284_vm0, %v653_v0  ;;  %581 = vmatprep.mubr.msk.bf16.mxu0 %vm654_vm1, %v653_v0  ;;  %s573_s16 = sshll.u32 %s748_s12, 3  ;;  %s561_s20 = sshll.u32 %s748_s12, 2  ;;  %v655_v4 = vmov -1e+30   ;;  %vm344_vm3 = vcmask 130048  }
   0xe   : > { %585 = vmatprep.subr.bf16.mxu1 %v653_v0  ;;  %587 = vmatprep.mubr.msk.bf16.mxu1 %vm654_vm1, %v653_v0  ;;  %s257_s19 = scalar_lea.vmem %s740_s1, %s573_s16  ;;  %s248_s23 = scalar_lea.vmem %s739_s0, %s561_s20  ;;  %282 = vst.msk [vmem:[#allocation2] sm:$0xff] %vm281_vm2, %v655_v4  ;;  %283 = vst.msk [vmem:[#allocation3] sm:$0xff] %vm281_vm2, %v653_v0  ;;  %v656_v10 = vmov 0   ;;  %vm441_vm4 = vcmask 60416  }
   0xf   : > { %v621_v1 = vld [vmem:[%s257_s19] sm:$0xff]   ;;  %619 = vset.pattern.permute.xlu0 %v656_v10  ;;  %620 = vset.pattern.permute.xlu1 %v656_v10  ;;  %s267_s26 = scalar_lea.vmem %s741_s2, %s573_s16  ;;  %s275_s29 = scalar_lea.vmem %s742_s3, %s561_s20 }
  0x10   : > { %v301_v2 = vsel %vm284_vm0, %v621_v1, 0  ;;  %v286_v3 = vld [vmem:[%s248_s23] sm:$0xf] }
  0x11   : > { %580 = vmatpush3.bf16.xpose.msra.mxu0 %v301_v2  ;;  %v622_v15 = vld [vmem:[%s267_s26] sm:$0xff]  }
  0x12   : > { %586 = vmatpush3.bf16.msra.mxu1 %v622_v15 }
  0x14   : > { %v368_v30 = vld [vmem:[#allocation4] sm:$0xff] }
  0x15   : > { %v343_v11 = vld [vmem:[#allocation2] sm:$0xff]  ;;  %v360_v24 = vld [vmem:[#allocation3] sm:$0xff] }
  0x18   : > { %582 = vmatmul.mubr.msk.bf16.vlgmr.msra.gmra.mxu0 %vm284_vm0, %v286_v3 }
  0xd8   : > { %v337_v5 = vpop.f32.mrf.mxu0 }
  0xd9   : > { %v345_v6 = vsel %vm344_vm3, %v337_v5, -inf }
  0xda   : > { %346 = vmax.xlane.f32.xlu0 %v345_v6  ;;  %v583_v7 = vpop.f32.mrf.mxu0 }
  0xdc   : > { %v340_v8 = vpop.f32.mrf.mxu0 }
  0xde   : > { %v584_v9 = vpop.f32.mrf.mxu0 }
 0x163   : > { %v347_v12 = vpop.xlane.xlu0 %346 }
 0x164   : > { %v348_v13 = vmax.f32 %v343_v11, %v347_v12 }
 0x166   : > { %v349_v14 = vsub.f32 %v343_v11, %v348_v13  ;;  %427 = vst.msk [vmem:[#allocation2] sm:$0xff] %vm281_vm2, %v348_v13  ;;  %354 = vperm.xlu0 %619, %v348_v13  }
 0x168   : > { %v350_v20 = vmul.f32 1.442695, %v349_v14 }
 0x1e1   : > { %v355_v16 = vpop.permute.xlu0 %354 }
 0x1e2   : > { %v357_v17 = vsub.f32 %v337_v5, %v355_v16 }
 0x1e4   : > { %v358_v18 = vmul.f32 1.442695, %v357_v17 }
 0x1e6   : > { %623 = vpow2.f32 %v358_v18 }
 0x1e7   : > { %625 = vpow2.f32 %v350_v20 }
 0x1f3   : > { %v624_v19 = vpop.eup %623 }
 0x1f4   : > { %v362_v21 = vsel %vm344_vm3, %v624_v19, 0.0  ;;  %v375_v22 = vpack.c.bf16 %v624_v19, %v624_v19  ;;  %v626_v23 = vpop.eup %625 }
 0x1f5   : > { %363 = vadd.xlane.f32.xlu1 %v362_v21  ;;  %v361_v25 = vmul.f32 %v626_v23, %v360_v24 }
 0x1f6   : > { %588 = vmatmul.mubr.msk.bf16.vlgmr.msra.gmra.mxu1 %vm344_vm3, %v375_v22 }
 0x206   : > { %371 = vperm.xlu1 %620, %v626_v23  }
 0x27e   : > { %v364_v26 = vpop.xlane.xlu1 %363 }
 0x27f   : > { %v365_v27 = vadd.f32 %v364_v26, %v361_v25 }
 0x281   : > { %367 = vst.msk [vmem:[#allocation3] sm:$0xff] %vm281_vm2, %v365_v27 }
 0x282   : > { %v372_v31 = vpop.permute.xlu1 %371 }
 0x283   : > { %v374_v32 = vmul.f32 %v372_v31, %v368_v30 }
 0x288   : > { %v432_v28 = vld [vmem:[#allocation3] sm:$0xff] }
 0x289   : > { %627 = vrcp.f32 %v432_v28 }
 0x296   : > { %v628_v29 = vpop.eup %627 }
 0x297   : > { %436 = vperm.xlu1 %620, %v628_v29  }
 0x2b6   : > { %v419_v33 = vpop.f32.mrf.mxu1 }
 0x2b7   : > { %v425_v34 = vadd.f32 %v419_v33, %v374_v32 }
 0x2b8   : > { %v589_v35 = vpop.f32.mrf.mxu1 }
 0x2b9   : > { %426 = vst.msk [vmem:[#allocation4] sm:$0xff] %vm284_vm0, %v425_v34 }
 0x2ba   : > { %v422_v36 = vpop.f32.mrf.mxu1 }
 0x2bc   : > { %v590_v37 = vpop.f32.mrf.mxu1 }
 0x2c0   : > { %v431_v38 = vld [vmem:[#allocation4] sm:$0xff] }
 0x312   : > { %v437_v39 = vpop.permute.xlu1 %436 }
 0x313   : > { %v439_v40 = vmul.f32 %v437_v39, %v431_v38 }
 0x315   : > { %v440_v41 = vpack.c.bf16 %v439_v40, %v439_v40 }
 0x317   : > { %442 = vst.msk [vmem:[%s275_s29] sm:$0xf] %vm441_vm4, %v440_v41 }
 0x318 PF: > { %s13_s14 = sadd.s32 1, %s651_s14   ;;  %s743_s12 = smov %s647_s13 }
 0x319   : > { %p10_p5 = scmp.ge.s32.totalorder %s13_s14, 10   ;;  %s744_s13 = smov %s746_s15 }
 0x31b   :  { %12 = sbr.rel (!%p10_p5) target bundleno = 2 (0x2), region = 76 }

// kernel: decoder_layer_forward.12
= control target key start
LH: loop header
LB: loop body
LE: loop exit
PB: predicated region body
PF: predicated region fallthrough
CT: control target
= control target key end

     0   :  { %s697_s15 = smov 0   ;;  %s699_s16 = smov 0   ;;  %s780_s0 = inlined_call_operand.vmem [shape: f32[2,16,32], index: 0, kind: input, shape index: {}]   ;;  %s781_s1 = inlined_call_operand.vmem [shape: bf16[32,64], index: 1, kind: input, shape index: {}]   ;;  %s782_s2 = inlined_call_operand.vmem [shape: f32[1,64], index: 2, kind: input, shape index: {}]   ;;  %s783_s3 = inlined_call_operand.vmem [shape: bf16[8,16,8], index: 3, kind: output, shape index: {0}]   ;;  %s784_s4 = inlined_call_operand.vmem [shape: bf16[8,16,8], index: 4, kind: output, shape index: {1}]  }
   0x1   :  { %s701_s17 = smov 0  }
   0x2 LB: > { %s27_s18 = sadd.s32 1, %s657_s16  ;;  %p559_p0 = scmp.ge.s32.totalorder %s661_s17, 1  ;;  %s661_s17 = sphi %s701_s17, %s15_s17   ;;  %s657_s16 = sphi %s699_s16, %s786_s16   ;;  %s653_s15 = sphi %s697_s15, %s785_s15  }
   0x3   : > { %p29_p1 = scmp.ge.s32.totalorder %s27_s18, 2  ;;  %p188_p2 = scmp.lt.s32.totalorder %s661_s17, 3 }
   0x5   : > { %s788_s18 = smov (%p29_p1, %s27_s18), 0  ;;  %p189_p3 = pnand %p559_p0, %p188_p2 }
   0x6   : > { %p234_p4 = scmp.lt.s32.totalorder (!%p189_p3), %s653_s15, 1  ;;  %s562_s28 = sshll.u32 (!%p189_p3), %s653_s15, 2 }
   0x7   : > { %192 = sbr.rel (%p189_p3) target bundleno = 358 (0x166), region = 32  ;;  %p245_p5 = scmp.lt.s32.totalorder (!%p189_p3), %s562_s28, 7 }
   0x8   : > { %s665_s9 = smov (!%p189_p3), 120   ;;  %s666_s10 = smov (!%p189_p3), 96  }
   0x9   : > { %s667_s11 = smov (!%p189_p3), 88   ;;  %s668_s12 = smov (!%p189_p3), 112  }
   0xa   : > { %s669_s13 = smov (!%p189_p3), 80   ;;  %s670_s14 = smov (!%p189_p3), 104  }
   0xc   : > { %v637_v0 = vld [vmem:[%s781_s1 + $0x8] sm:$0xff]   ;;  %v663_v1 = vmov 0.0   ;;  %v638_v2 = vld [vmem:[%s781_s1] sm:$0xff]   ;;  %vm664_vm0 = vmmov 0   ;;  %s235_s23 = scalar_select %p234_p4, %s653_s15, 1  ;;  %vm294_vm1 = vcmask 261120  }
   0xd   : > { %596 = vmatprep.subr.bf16.mxu0 %v663_v1  ;;  %600 = vmatprep.mubr.msk.bf16.mxu0 %vm664_vm0, %v663_v1  ;;  %s790_s28 = smov (!%p245_p5, %s562_s28), 7  ;;  %v568_v6 = vld [vmem:[%s782_s2] ss:$0 sm:$0xff]  ;;  %vm347_vm2 = vcmask 60416   ;;  %s671_s15 = smov 72  }
   0xe   : > { %597 = vmatpush3.bf16.msra.mxu0 %v637_v0  ;;  %s588_s24 = sshll.u32 %s235_s23, 4  ;;  %s589_s5 = sshll.u32 %s790_s28, 3 }
   0xf   : > { %598 = vmatprep.subr.bf16.mxu0 %v663_v1  ;;  %s241_s27 = scalar_lea.vmem %s780_s0, %s588_s24  ;;  %s740_s8 = scalar_lea.vmem %s783_s3, %s589_s5 }
  0x10   : > { %v268_v3 = vld [vmem:[%s241_s27] sm:$0xff]  ;;  %v269_v4 = vld [vmem:[%s241_s27 + $0x8] sm:$0xff]  ;;  %s264_s21 = scalar_lea.vmem %s784_s4, %s589_s5 }
  0x11   : > { %v270_v5 = vpack.c.bf16 %v269_v4, %v268_v3 }
  0x12   : > { %599 = vmatpush3.bf16.msra.mxu0 %v638_v2 }
  0x15   : > { %601 = vmatmul.mubr.msk.bf16.vlgmr.msra.gmra.mxu0 %vm294_vm1, %v270_v5 }
  0xd5   : > { %v332_v7 = vpop.f32.mrf.mxu0 }
  0xd6   : > { %v333_v8 = vadd.f32 %v568_v6, %v332_v7 }
  0xd7   : > { %v602_v9 = vpop.f32.mrf.mxu0 }
  0xd8   : > { %v591_v10 = vpack.c.bf16 %v333_v8, %v333_v8 }
  0xd9   : > { %v335_v11 = vpop.f32.mrf.mxu0 }
  0xda   : > { %v336_v12 = vadd.f32 %v568_v6, %v335_v11  ;;  %350 = vrot.lane.b32.xlu1 %v591_v10, %s665_s9  ;;  %377 = vrot.lane.b32.xlu0 %v591_v10, %s666_s10  ;;  %348 = vst.msk [vmem:[%s740_s8] sm:$0xf] %vm347_vm2, %v591_v10 }
  0xdb   : > { %v603_v13 = vpop.f32.mrf.mxu0 }
  0xdc   : > { %v592_v14 = vpack.c.bf16 %v336_v12, %v336_v12 }
  0xde   : > { %385 = vrot.lane.b32.xlu0 %v591_v10, %s667_s11  ;;  %352 = vrot.lane.b32.xlu1 %v592_v14, %s665_s9  ;;  %349 = vst.msk [vmem:[%s740_s8 + $0x4] sm:$0xf] %vm347_vm2, %v592_v14 }
  0xe2   : > { %359 = vrot.lane.b32.xlu0 %v591_v10, %s668_s12  ;;  %387 = vrot.lane.b32.xlu1 %v592_v14, %s667_s11 }
  0xe6   : > { %394 = vrot.lane.b32.xlu0 %v591_v10, %s669_s13  ;;  %361 = vrot.lane.b32.xlu1 %v592_v14, %s668_s12 }
  0xea   : > { %368 = vrot.lane.b32.xlu0 %v591_v10, %s670_s14  ;;  %396 = vrot.lane.b32.xlu1 %v592_v14, %s669_s13 }
  0xee   : > { %370 = vrot.lane.b32.xlu1 %v592_v14, %s670_s14  ;;  %379 = vrot.lane.b32.xlu0 %v592_v14, %s666_s10 }
  0xf2   : > { %405 = vrot.lane.b32.xlu1 %v592_v14, %s671_s15  ;;  %403 = vrot.lane.b32.xlu0 %v591_v10, %s671_s15 }
 0x14c   : > { %v351_v15 = vpop.permute.xlu1 %350  ;;  %v378_v16 = vpop.permute.xlu0 %377 }
 0x14d   : > { %574 = vst.msk [vmem:[%s740_s8 + $0x8] sm:$0xf] %vm347_vm2, %v351_v15  ;;  %383 = vst.msk [vmem:[%s264_s21] sm:$0xf] %vm347_vm2, %v378_v16 }
 0x150   : > { %v386_v17 = vpop.permute.xlu0 %385  ;;  %v353_v18 = vpop.permute.xlu1 %352 }
 0x151   : > { %580 = vst.msk [vmem:[%s264_s21 + $0x8] sm:$0xf] %vm347_vm2, %v386_v17  ;;  %575 = vst.msk [vmem:[%s740_s8 + $0xc] sm:$0xf] %vm347_vm2, %v353_v18 }
 0x154   : > { %v360_v19 = vpop.permute.xlu0 %359  ;;  %v388_v20 = vpop.permute.xlu1 %387 }
 0x155   : > { %576 = vst.msk [vmem:[%s740_s8 + $0x10] sm:$0xf] %vm347_vm2, %v360_v19  ;;  %581 = vst.msk [vmem:[%s264_s21 + $0xc] sm:$0xf] %vm347_vm2, %v388_v20 }
 0x158   : > { %v395_v21 = vpop.permute.xlu0 %394  ;;  %v362_v22 = vpop.permute.xlu1 %361 }
 0x159   : > { %582 = vst.msk [vmem:[%s264_s21 + $0x10] sm:$0xf] %vm347_vm2, %v395_v21  ;;  %577 = vst.msk [vmem:[%s740_s8 + $0x14] sm:$0xf] %vm347_vm2, %v362_v22 }
 0x15c   : > { %v369_v23 = vpop.permute.xlu0 %368  ;;  %v397_v24 = vpop.permute.xlu1 %396 }
 0x15d   : > { %578 = vst.msk [vmem:[%s740_s8 + $0x18] sm:$0xf] %vm347_vm2, %v369_v23  ;;  %583 = vst.msk [vmem:[%s264_s21 + $0x14] sm:$0xf] %vm347_vm2, %v397_v24 }
 0x160   : > { %v371_v25 = vpop.permute.xlu1 %370  ;;  %v380_v26 = vpop.permute.xlu0 %379 }
 0x161   : > { %579 = vst.msk [vmem:[%s740_s8 + $0x1c] sm:$0xf] %vm347_vm2, %v371_v25  ;;  %384 = vst.msk [vmem:[%s264_s21 + $0x4] sm:$0xf] %vm347_vm2, %v380_v26 }
 0x164   : > { %v406_v27 = vpop.permute.xlu1 %405  ;;  %v404_v28 = vpop.permute.xlu0 %403 }
 0x165   : > { %585 = vst.msk [vmem:[%s264_s21 + $0x1c] sm:$0xf] %vm347_vm2, %v406_v27  ;;  %584 = vst.msk [vmem:[%s264_s21 + $0x18] sm:$0xf] %vm347_vm2, %v404_v28 }
 0x166 PF: > { %s15_s17 = sadd.s32 1, %s661_s17   ;;  %s785_s15 = smov %s657_s16 }
 0x167   : > { %p12_p6 = scmp.ge.s32.totalorder %s15_s17, 4   ;;  %s786_s16 = smov %s788_s18 }
 0x169   :  { %14 = sbr.rel (!%p12_p6) target bundleno = 2 (0x2), region = 80 }

// kernel: decoder_layer_forward.15
= control target key start
LH: loop header
LB: loop body
LE: loop exit
PB: predicated region body
PF: predicated region fallthrough
CT: control target
= control target key end

     0   :  { %vm35_vm0 = vcmask 261120   ;;  %v378_v18 = vmov 0.0   ;;  %vm379_vm1 = vmmov 0   ;;  %vm87_vm2 = vcmask 257024   ;;  %s485_s0 = inlined_call_operand.vmem [shape: f32[16,32], index: 0, kind: input, shape index: {}]   ;;  %s486_s6 = inlined_call_operand.vmem [shape: f32[1,32], index: 6, kind: input, shape index: {}]   ;;  %s487_s3 = inlined_call_operand.vmem [shape: bf16[32,128], index: 3, kind: input, shape index: {}]   ;;  %s488_s5 = inlined_call_operand.vmem [shape: bf16[128,32], index: 5, kind: input, shape index: {}]   ;;  %s489_s1 = inlined_call_operand.vmem [shape: f32[1,32], index: 1, kind: input, shape index: {}]   ;;  %s490_s2 = inlined_call_operand.vmem [shape: f32[1,32], index: 2, kind: input, shape index: {}]   ;;  %s491_s4 = inlined_call_operand.vmem [shape: f32[1,128], index: 4, kind: input, shape index: {}]   ;;  %s492_s7 = inlined_call_operand.vmem [shape: f32[16,32], index: 7, kind: output, shape index: {}]  }
   0x1   :  { %v31_v0 = vld [vmem:[%s485_s0] sm:$0xff]  ;;  %v32_v2 = vld [vmem:[%s485_s0 + $0x8] sm:$0xff]  ;;  %333 = vmatprep.subr.bf16.mxu0 %v378_v18  ;;  %341 = vmatprep.subr.bf16.mxu1 %v378_v18  ;;  %v366_v20 = vld [vmem:[%s488_s5 + $0x38] sm:$0xff]  }
   0x2   :  { %v305_v1 = vld [vmem:[%s486_s6] ss:$0 sm:$0xff]  ;;  %v36_v3 = vsel %vm35_vm0, %v31_v0, 0.0  ;;  %v39_v6 = vsel %vm35_vm0, %v32_v2, 0.0  ;;  %v363_v17 = vld [vmem:[%s487_s3 + $0x8] sm:$0xff]   ;;  %337 = vmatprep.mubr.msk.bf16.mxu0 %vm379_vm1, %v378_v18  ;;  %357 = vmatprep.mubr.msk.bf16.mxu1 %vm379_vm1, %v378_v18  ;;  %v367_v21 = vld [vmem:[%s488_s5 + $0x30] sm:$0xff]  }
   0x3   :  { %v97_v4 = vadd.f32 %v305_v1, %v31_v0  ;;  %v98_v5 = vadd.f32 %v305_v1, %v32_v2  ;;  %37 = vadd.xlane.f32.xlu0 %v36_v3  ;;  %334 = vmatpush3.bf16.msra.mxu0 %v363_v17  ;;  %v364_v19 = vld [vmem:[%s487_s3] sm:$0xff]   ;;  %v368_v22 = vld [vmem:[%s488_s5 + $0x28] sm:$0xff]   ;;  %v370_v24 = vld [vmem:[%s488_s5 + $0x18] sm:$0xff]  }
   0x4   :  { %335 = vmatprep.subr.bf16.mxu0 %v378_v18  ;;  %342 = vmatpush3.bf16.msra.mxu1 %v366_v20  ;;  %v369_v23 = vld [vmem:[%s488_s5 + $0x20] sm:$0xff]   ;;  %v371_v44 = vld [vmem:[%s488_s5 + $0x10] sm:$0xff]   ;;  %v372_v45 = vld [vmem:[%s488_s5 + $0x8] sm:$0xff]  }
   0x5   :  { %99 = vst.msk [vmem:[#allocation3] sm:$0xff] %vm35_vm0, %v97_v4  ;;  %100 = vst.msk [vmem:[#allocation3 + $0x8] sm:$0xff] %vm35_vm0, %v98_v5  ;;  %343 = vmatprep.subr.bf16.mxu1 %v378_v18  ;;  %v301_v32 = vld [vmem:[%s489_s1] ss:$0 sm:$0xff] }
   0x6   :  { %v302_v34 = vld [vmem:[%s490_s2] ss:$0 sm:$0xff] }
   0x7   :  { %40 = vadd.xlane.f32.xlu0 %v39_v6  ;;  %336 = vmatpush3.bf16.msra.mxu0 %v364_v19  ;;  %v373_v46 = vld [vmem:[%s488_s5] sm:$0xff]  }
   0x8   :  { %344 = vmatpush3.bf16.msra.mxu1 %v367_v21  ;;  %v306_v47 = vld [vmem:[%s491_s4] ss:$0 sm:$0xff] }
   0x9   :  { %345 = vmatprep.subr.bf16.mxu1 %v378_v18 }
   0xc   :  { %346 = vmatpush3.bf16.msra.mxu1 %v368_v22  ;;  %v178_v57 = vld [vmem:[#allocation3] sm:$0xff]  ;;  %v179_v61 = vld [vmem:[#allocation3 + $0x8] sm:$0xff] }
   0xd   :  { %347 = vmatprep.subr.bf16.mxu1 %v378_v18 }
  0x10   :  { %348 = vmatpush3.bf16.msra.mxu1 %v369_v23 }
  0x11   :  { %349 = vmatprep.subr.bf16.mxu1 %v378_v18 }
  0x14   :  { %350 = vmatpush3.bf16.msra.mxu1 %v370_v24 }
  0x15   :  { %351 = vmatprep.subr.bf16.mxu1 %v378_v18 }
  0x18   :  { %352 = vmatpush3.bf16.msra.mxu1 %v371_v44 }
  0x19   :  { %353 = vmatprep.subr.bf16.mxu1 %v378_v18 }
  0x1c   :  { %354 = vmatpush3.bf16.msra.mxu1 %v372_v45 }
  0x1d   :  { %355 = vmatprep.subr.bf16.mxu1 %v378_v18 }
  0x20   :  { %356 = vmatpush3.bf16.msra.mxu1 %v373_v46 }
  0x8c   :  { %v38_v7 = vpop.xlane.xlu0 %37 }
  0x8d   :  { %v43_v8 = vmul.f32 0.03125, %v38_v7 }
  0x8f   :  { %v45_v9 = vsub.f32 %v31_v0, %v43_v8 }
  0x90   :  { %v41_v10 = vpop.xlane.xlu0 %40 }
  0x91   :  { %v44_v11 = vmul.f32 0.03125, %v41_v10  ;;  %v47_v12 = vmul.f32 %v45_v9, %v45_v9 }
  0x93   :  { %v46_v13 = vsub.f32 %v32_v2, %v44_v11  ;;  %v49_v14 = vsel %vm35_vm0, %v47_v12, 0.0 }
  0x94   :  { %50 = vadd.xlane.f32.xlu1 %v49_v14 }
  0x95   :  { %v48_v15 = vmul.f32 %v46_v13, %v46_v13 }
  0x97   :  { %v52_v16 = vsel %vm35_vm0, %v48_v15, 0.0 }
  0x98   :  { %53 = vadd.xlane.f32.xlu1 %v52_v16 }
 0x11d   :  { %v51_v25 = vpop.xlane.xlu1 %50 }
 0x11e   :  { %v55_v26 = vmul.f32 0.03125, %v51_v25 }
 0x120   :  { %v57_v27 = vadd.f32 1e-05, %v55_v26 }
 0x121   :  { %v54_v28 = vpop.xlane.xlu1 %53 }
 0x122   :  { %374 = vrsqrt.f32 %v57_v27  ;;  %v56_v29 = vmul.f32 0.03125, %v54_v28 }
 0x124   :  { %v58_v30 = vadd.f32 1e-05, %v56_v29 }
 0x126   :  { %376 = vrsqrt.f32 %v58_v30 }
 0x12f   :  { %v375_v31 = vpop.eup %374 }
 0x130   :  { %v61_v33 = vmul.f32 %v375_v31, %v45_v9 }
 0x132   :  { %v69_v35 = vmul.f32 %v301_v32, %v61_v33 }
 0x133   :  { %v377_v36 = vpop.eup %376 }
 0x134   :  { %v77_v37 = vadd.f32 %v302_v34, %v69_v35  ;;  %v62_v38 = vmul.f32 %v377_v36, %v46_v13 }
 0x136   :  { %v319_v39 = vpack.c.bf16 %v77_v37, %v77_v37  ;;  %v70_v40 = vmul.f32 %v301_v32, %v62_v38 }
 0x138   :  { %88 = vst.msk [vmem:[#allocation2] sm:$0xf] %vm87_vm2, %v319_v39  ;;  %v78_v41 = vadd.f32 %v302_v34, %v70_v40 }
 0x13a   :  { %v320_v42 = vpack.c.bf16 %v78_v41, %v78_v41 }
 0x13c   :  { %89 = vst.msk [vmem:[#allocation2 + $0x4] sm:$0xf] %vm87_vm2, %v320_v42 }
 0x143   :  { %v365_v43 = vld [vmem:[#allocation2] sm:$0xff]  }
 0x144   :  { %338 = vmatmul.mubr.msk.bf16.vlgmr.msra.gmra.mxu0 %vm35_vm0, %v365_v43 }
 0x204   :  { %v169_v48 = vpop.f32.mrf.mxu0 }
 0x205   :  { %v170_v50 = vadd.f32 %v306_v47, %v169_v48 }
 0x206   :  { %v339_v49 = vpop.f32.mrf.mxu0 }
 0x207   :  { %v176_v54 = vmax.f32 %v170_v50, 0.0 }
 0x208   :  { %v172_v51 = vpop.f32.mrf.mxu0 }
 0x209   :  { %v173_v52 = vadd.f32 %v306_v47, %v172_v51 }
 0x20a   :  { %v340_v53 = vpop.f32.mrf.mxu0 }
 0x20b   :  { %v177_v55 = vmax.f32 %v173_v52, 0.0 }
 0x20d   :  { %v180_v56 = vpack.c.bf16 %v177_v55, %v176_v54 }
 0x20f   :  { %358 = vmatmul.mubr.bf16.vlgmr.msra.gmra.mxu1 %v180_v56 }
 0x2cf   :  { %v279_v58 = vpop.f32.mrf.mxu1 }
 0x2d0   :  { %v286_v59 = vadd.f32 %v279_v58, %v178_v57 }
 0x2d1   :  { %v359_v60 = vpop.f32.mrf.mxu1 }
 0x2d2   :  { %288 = vst.msk [vmem:[#allocation3] sm:$0xff] %vm35_vm0, %v286_v59 }
 0x2d3   :  { %v282_v62 = vpop.f32.mrf.mxu1 }
 0x2d4   :  { %v287_v63 = vadd.f32 %v282_v62, %v179_v61 }
 0x2d5   :  { %v360_v0 = vpop.f32.mrf.mxu1 }
 0x2d6   :  { %289 = vst.msk [vmem:[#allocation3 + $0x8] sm:$0xff] %vm35_vm0, %v287_v63 }
 0x2d9   :  { %v293_v1 = vld [vmem:[#allocation3] sm:$0xff] }
 0x2da   :  { %295 = vst.msk [vmem:[%s492_s7] sm:$0xff] %vm35_vm0, %v293_v1 }
 0x2dd   :  { %v294_v2 = vld [vmem:[#allocation3 + $0x8] sm:$0xff] }
 0x2de   :  { %296 = vst.msk [vmem:[%s492_s7 + $0x8] sm:$0xff] %vm35_vm0, %v294_v2 }

</bundles_post_ra>
